<compile_context>
chip_gen: v6e
topology: v6e:2x2x1
jax: 0.10.0
libtpu: 0.0.40
codegen_flags: <defaults>
</compile_context>

<pallas_src>
from functools import partial

import numpy as np
import jax
import jax.numpy as jnp
from jax import lax
from jax.experimental import pallas as pl
from jax.experimental.pallas import tpu as pltpu


def _attention_kernel(xp_ref, wq_ref, wk_ref, wv_ref, bq_ref, bk_ref, bv_ref,
                      wp_ref, bp_ref, o_ref, ybuf_ref,
                      *, N, C, H, Bblk, flat_out):
    """One batch block per grid step.

    xp_ref   : (Bblk, N+2, C)  bf16  zero-padded input (Conv1d padding=1)
    wq/wk/wv : (3C, C)         bf16  qkv conv weights, im2col row-stacked
                                      (tap-major); qk scale folded into wq
    bq/bk/bv : (1, C)          f32   (scale folded into bq)
    wp_ref   : (3C, C)         bf16  proj conv weight, im2col row-stacked
    bp_ref   : (1, C)          f32
    o_ref    : (Bblk, N*C) if flat_out else (Bblk, N, C)
    ybuf_ref : (Bblk, N+2, C)  bf16  zero-padded scratch feeding the proj conv
    """
    f32, bf16 = jnp.float32, jnp.bfloat16
    dh = C // H
    rows = Bblk * N

    # ---- qkv Conv1d(k=3, pad=1): one K=3C matmul per output ----------------
    xp = xp_ref[...]                                          # (Bblk, N+2, C) bf16
    xw = jnp.concatenate(
        [xp[:, 0:N, :], xp[:, 1:N + 1, :], xp[:, 2:N + 2, :]], axis=-1)
    xw = xw.reshape(rows, 3 * C)                              # im2col, bf16

    q = jnp.dot(xw, wq_ref[...], preferred_element_type=f32) + bq_ref[...]
    k = jnp.dot(xw, wk_ref[...], preferred_element_type=f32) + bk_ref[...]
    v = jnp.dot(xw, wv_ref[...], preferred_element_type=f32) + bv_ref[...]

    # ---- heads to the leading axis: one reshape + swapaxes per tensor ------
    def to_heads(t):                                          # -> (Bblk*H, N, dh)
        t4 = t.astype(bf16).reshape(Bblk, N, H, dh)
        return jnp.swapaxes(t4, 1, 2).reshape(Bblk * H, N, dh)

    qh, kh, vh = to_heads(q), to_heads(k), to_heads(v)

    # ---- attention core (qk scale already folded into q) -------------------
    s = jnp.einsum('znd,zmd->znm', qh, kh,
                   preferred_element_type=f32)                # (Bblk*H, N, N)
    s_max = jnp.max(s, axis=-1, keepdims=True)
    e = jnp.exp(s - s_max)                                    # f32 (v5e-safe)
    l = jnp.sum(e, axis=-1, keepdims=True)                    # f32 row sums
    pv = jnp.einsum('znm,zmd->znd', e.astype(bf16), vh,
                    preferred_element_type=f32)               # (Bblk*H, N, dh)
    pv = pv * pl.reciprocal(l, approx=True)                   # normalize small slab
    # TODO(synk): KV-tile s/e (online softmax) for large N to respect v7x VMEM.

    y = jnp.swapaxes(pv.astype(bf16).reshape(Bblk, H, N, dh), 1, 2)
    y = y.reshape(Bblk, N, C)                                 # (Bblk, N, C) bf16

    # ---- proj Conv1d(k=3, pad=1) via zero-padded bf16 VMEM scratch ----------
    # Pad rows are re-zeroed every step: the "parallel" grid axis may be split
    # across TensorCores, so a program_id(0)==0 one-time init is not safe.
    zrow = jnp.zeros((Bblk, 1, C), bf16)
    ybuf_ref[:, 0:1, :] = zrow
    ybuf_ref[:, N + 1:N + 2, :] = zrow
    ybuf_ref[:, 1:N + 1, :] = y
    yb = ybuf_ref[...]                                        # (Bblk, N+2, C) bf16
    yw = jnp.concatenate(
        [yb[:, 0:N, :], yb[:, 1:N + 1, :], yb[:, 2:N + 2, :]], axis=-1)
    yw = yw.reshape(rows, 3 * C)
    out = jnp.dot(yw, wp_ref[...], preferred_element_type=f32) + bp_ref[...]

    if flat_out:
        # Lane-dense (unmasked) stores when C < 128.
        o_ref[...] = out.reshape(Bblk, N * C).astype(o_ref.dtype)
    else:
        o_ref[...] = out.reshape(Bblk, N, C).astype(o_ref.dtype)


def _vmem_capacity_bytes():
    try:
        cap = int(pltpu.get_tpu_info().vmem_capacity_bytes)
        if cap > 0:
            return cap
    except Exception:
        pass
    return 64 * 1024 * 1024          # conservative fallback (v7x per-TC size)


def _vmem_block_estimate(bblk, N, C, H):
    """Rough live-bytes estimate for one batch block (double-buffered I/O,
    scratch, and the major in-kernel temporaries)."""
    bf, f = 2, 4
    rows = bblk * N
    est = 0
    est += 2 * bblk * (N + 2) * C * bf        # input block, double-buffered
    est += 2 * bblk * N * C * f               # output block, double-buffered
    est += bblk * (N + 2) * C * bf            # ybuf scratch
    est += 2 * rows * 3 * C * bf              # x / y im2col windows
    est += 3 * rows * C * (f + bf)            # q, k, v (f32) + head-major bf16
    est += H * bblk * N * N * (2 * f + bf)    # scores f32 + exp f32 + probs bf16
    est += 2 * rows * C * f                   # pv + y
    est += 4 * 3 * C * C * bf + 4 * C * f     # resident weights / biases
    return est


def _pick_batch_block(B, N, C, H, *, budget, min_steps):
    """Largest divisor of B whose block fits the VMEM budget while leaving at
    least `min_steps` grid steps (DMA double-buffering / megacore sharding need
    work to overlap); relaxes the step requirement if B is too small."""
    divisors = [d for d in range(1, B + 1) if B % d == 0]
    fits = [d for d in divisors
            if _vmem_block_estimate(d, N, C, H) <= budget] or [1]
    for want in (min_steps, 2, 1):
        ok = [d for d in fits if B // d >= want]
        if ok:
            return max(ok)
    return 1


def attention_forward(x, wqkv, bqkv, wproj, bproj, *, num_heads, qk_scale=None,
                      batch_block=None):
    """x: (B, N, C) f32.  wqkv: (3C, C, 3), bqkv: (3C,), wproj: (C, C, 3), bproj: (C,)."""
    B, N, C = x.shape
    assert C % num_heads == 0
    dh = C // num_heads
    scale = qk_scale if qk_scale is not None else dh ** -0.5

    # VMEM-aware block sizing.  Chips exposing 64 MiB/TC (v7x) also shard the
    # parallel grid axis over 2 TensorCores -> require >= 2 steps per core.
    vmem_cap = _vmem_capacity_bytes()
    vmem_limit = int(min(vmem_cap * 7 // 8, 112 * 1024 * 1024))
    min_steps = 4 if vmem_cap <= 64 * 1024 * 1024 else 2
    bblk = (batch_block if batch_block is not None else
            _pick_batch_block(B, N, C, num_heads,
                              budget=vmem_limit // 2, min_steps=min_steps))
    assert B % bblk == 0, (B, bblk)

    # Lane-dense output (unmasked vst) when C is lane-sparse, as long as the
    # batch block keeps the (8, 128) BlockSpec rule satisfied.
    flat_out = (C % 128 != 0) and (bblk % 8 == 0 or bblk == B)

    # Zero-pad the sequence axis (Conv1d padding=1); activations travel bf16.
    x_pad = jnp.pad(x, ((0, 0), (1, 1), (0, 0))).astype(jnp.bfloat16)

    # PyTorch Conv1d weights (Cout, Cin, K=3) -> tap-major (K, Cin, Cout) ->
    # im2col row-stacked (K*Cin, Cout).  q/k/v are pre-split (no runtime lane
    # slicing of a 3C-wide output); the qk scale is folded into wq / bq.
    wqkv_t = jnp.transpose(wqkv, (2, 1, 0)).reshape(3 * C, 3 * C)
    wq = (wqkv_t[:, 0 * C:1 * C] * scale).astype(jnp.bfloat16)
    wk = wqkv_t[:, 1 * C:2 * C].astype(jnp.bfloat16)
    wv = wqkv_t[:, 2 * C:3 * C].astype(jnp.bfloat16)
    bq = (bqkv[0 * C:1 * C] * scale).reshape(1, C).astype(jnp.float32)
    bk = bqkv[1 * C:2 * C].reshape(1, C).astype(jnp.float32)
    bv = bqkv[2 * C:3 * C].reshape(1, C).astype(jnp.float32)
    wp = jnp.transpose(wproj, (2, 1, 0)).reshape(3 * C, C).astype(jnp.bfloat16)
    bp = bproj.reshape(1, C).astype(jnp.float32)

    kernel = partial(_attention_kernel, N=N, C=C, H=num_heads, Bblk=bblk,
                     flat_out=flat_out)
    w_spec = pl.BlockSpec((3 * C, C), lambda b: (0, 0))
    b_spec = pl.BlockSpec((1, C), lambda b: (0, 0))
    if flat_out:
        out_shape = jax.ShapeDtypeStruct((B, N * C), x.dtype)
        out_spec = pl.BlockSpec((bblk, N * C), lambda b: (b, 0))
    else:
        out_shape = jax.ShapeDtypeStruct((B, N, C), x.dtype)
        out_spec = pl.BlockSpec((bblk, N, C), lambda b: (b, 0, 0))

    res = pl.pallas_call(
        kernel,
        out_shape=out_shape,
        grid=(B // bblk,),
        in_specs=[
            pl.BlockSpec((bblk, N + 2, C), lambda b: (b, 0, 0)),
            w_spec, w_spec, w_spec,
            b_spec, b_spec, b_spec,
            w_spec, b_spec,
        ],
        out_specs=out_spec,
        scratch_shapes=[pltpu.VMEM((bblk, N + 2, C), jnp.bfloat16)],
        compiler_params=pltpu.CompilerParams(
            dimension_semantics=("parallel",),
            vmem_limit_bytes=vmem_limit),
    )(x_pad, wq, wk, wv, bq, bk, bv, wp, bp)
    return res.reshape(B, N, C) if flat_out else res


def _reference(x, wqkv, bqkv, wproj, bproj, num_heads):
    """Pure-JAX f32 reference mirroring the PyTorch forward (NCL convs)."""
    B, N, C = x.shape
    dh = C // num_heads
    scale = dh ** -0.5

    def conv1d(x_bnc, w, b):  # w: (O, C, 3), pad=1
        x_bcn = jnp.transpose(x_bnc, (0, 2, 1))
        y = lax.conv_general_dilated(
            x_bcn, w, window_strides=(1,), padding=[(1, 1)],
            dimension_numbers=("NCH", "OIH", "NCH"))
        y = y + b[None, :, None]
        return jnp.transpose(y, (0, 2, 1))                    # (B, N, O)

    qkv = conv1d(x, wqkv, bqkv)                               # (B, N, 3C)
    qkv = qkv.reshape(B, N, 3, num_heads, dh).transpose(2, 0, 3, 1, 4)
    q, k, v = qkv[0], qkv[1], qkv[2]                          # (B, H, N, dh)
    attn = jnp.einsum("bhnd,bhmd->bhnm", q, k) * scale
    attn = jax.nn.softmax(attn, axis=-1)
    y = jnp.einsum("bhnm,bhmd->bhnd", attn, v)                # (B, H, N, dh)
    y = y.transpose(0, 2, 1, 3).reshape(B, N, C)
    return conv1d(y, wproj, bproj)                            # (B, N, C)


if __name__ == "__main__":
    B, N, C, H = 16, 8, 32, 4   # dim=32, num_heads=4 -> head_dim=8

    key = jax.random.PRNGKey(0)
    kx, kw1, kb1, kw2, kb2 = jax.random.split(key, 5)

    x = jax.random.normal(kx, (B, N, C), dtype=jnp.float32)
    # Conv1d(dim, 3*dim, k=3) and Conv1d(dim, dim, k=3) parameters.
    wqkv = jax.random.normal(kw1, (3 * C, C, 3), dtype=jnp.float32) * 0.05
    bqkv = jax.random.normal(kb1, (3 * C,), dtype=jnp.float32) * 0.05
    wproj = jax.random.normal(kw2, (C, C, 3), dtype=jnp.float32) * 0.05
    bproj = jax.random.normal(kb2, (C,), dtype=jnp.float32) * 0.05

    out = attention_forward(x, wqkv, bqkv, wproj, bproj, num_heads=H)
    out = jax.block_until_ready(out)

    ref = _reference(x, wqkv, bqkv, wproj, bproj, H)
    # bf16 MXU operands + approximate reciprocal -> loosened tolerances vs. the
    # pure-f32 reference (accumulation stays f32).
    np.testing.assert_allclose(np.asarray(out), np.asarray(ref),
                               rtol=2e-2, atol=2e-2)
    print("KERNEL_OK")
</pallas_src>

<mosaic_0001>
module attributes {stable_mosaic.version = 11 : i64} {
  func.func @_attention_kernel(%arg0: i32, %arg1: memref<4x10x32xbf16, #tpu.memory_space<vmem>>, %arg2: memref<96x32xbf16, #tpu.memory_space<vmem>>, %arg3: memref<96x32xbf16, #tpu.memory_space<vmem>>, %arg4: memref<96x32xbf16, #tpu.memory_space<vmem>>, %arg5: memref<1x32xf32, #tpu.memory_space<vmem>>, %arg6: memref<1x32xf32, #tpu.memory_space<vmem>>, %arg7: memref<1x32xf32, #tpu.memory_space<vmem>>, %arg8: memref<96x32xbf16, #tpu.memory_space<vmem>>, %arg9: memref<1x32xf32, #tpu.memory_space<vmem>>, %arg10: memref<4x8x32xf32, #tpu.memory_space<vmem>>, %arg11: memref<4x10x32xbf16, #tpu.memory_space<vmem>>) attributes {dimension_semantics = [#tpu.dimension_semantics<parallel>], iteration_bounds = array<i64: 4>, scalar_prefetch = 0 : i64, scratch_operands = 1 : i64, tpu.core_type = #tpu.core_type<tc>, window_params = [{transform_indices = @transform_0, window_bounds = array<i64: 4, 10, 32>}, {pipeline_mode = #tpu.pipeline_mode<synchronous>, transform_indices = @transform_1, window_bounds = array<i64: 96, 32>}, {pipeline_mode = #tpu.pipeline_mode<synchronous>, transform_indices = @transform_2, window_bounds = array<i64: 96, 32>}, {pipeline_mode = #tpu.pipeline_mode<synchronous>, transform_indices = @transform_3, window_bounds = array<i64: 96, 32>}, {pipeline_mode = #tpu.pipeline_mode<synchronous>, transform_indices = @transform_4, window_bounds = array<i64: 1, 32>}, {pipeline_mode = #tpu.pipeline_mode<synchronous>, transform_indices = @transform_5, window_bounds = array<i64: 1, 32>}, {pipeline_mode = #tpu.pipeline_mode<synchronous>, transform_indices = @transform_6, window_bounds = array<i64: 1, 32>}, {pipeline_mode = #tpu.pipeline_mode<synchronous>, transform_indices = @transform_7, window_bounds = array<i64: 96, 32>}, {pipeline_mode = #tpu.pipeline_mode<synchronous>, transform_indices = @transform_8, window_bounds = array<i64: 1, 32>}, {transform_indices = @transform_9, window_bounds = array<i64: 4, 8, 32>}]} {
    %c0 = arith.constant 0 : index
    %c0_0 = arith.constant 0 : index
    %c0_1 = arith.constant 0 : index
    %0 = vector.load %arg1[%c0, %c0_0, %c0_1] : memref<4x10x32xbf16, #tpu.memory_space<vmem>>, vector<4x10x32xbf16>
    %1 = vector.extract_strided_slice %0 {offsets = [0, 0, 0], sizes = [4, 8, 32], strides = [1, 1, 1]} : vector<4x10x32xbf16> to vector<4x8x32xbf16>
    %2 = vector.extract_strided_slice %0 {offsets = [0, 1, 0], sizes = [4, 8, 32], strides = [1, 1, 1]} : vector<4x10x32xbf16> to vector<4x8x32xbf16>
    %3 = vector.extract_strided_slice %0 {offsets = [0, 2, 0], sizes = [4, 8, 32], strides = [1, 1, 1]} : vector<4x10x32xbf16> to vector<4x8x32xbf16>
    %4 = tpu.concatenate %1, %2, %3 in 2 : vector<4x8x32xbf16>, vector<4x8x32xbf16>, vector<4x8x32xbf16> -> vector<4x8x96xbf16>
    %5 = vector.shape_cast %4 : vector<4x8x96xbf16> to vector<32x96xbf16>
    %c0_2 = arith.constant 0 : index
    %c0_3 = arith.constant 0 : index
    %6 = vector.load %arg2[%c0_2, %c0_3] : memref<96x32xbf16, #tpu.memory_space<vmem>>, vector<96x32xbf16>
    %cst = arith.constant dense<0.000000e+00> : vector<32x32xf32>
    %7 = tpu.matmul %5, %6, %cst {dimension_numbers = #tpu.dot_dimension_numbers<[1], [0], [0], [1], [0, 0, 1, 1], [], []>} : vector<32x96xbf16>, vector<96x32xbf16>, vector<32x32xf32> -> vector<32x32xf32>
    %c0_4 = arith.constant 0 : index
    %c0_5 = arith.constant 0 : index
    %8 = vector.load %arg5[%c0_4, %c0_5] : memref<1x32xf32, #tpu.memory_space<vmem>>, vector<1x32xf32>
    %9 = vector.broadcast %8 : vector<1x32xf32> to vector<32x32xf32>
    %10 = arith.addf %7, %9 : vector<32x32xf32>
    %c0_6 = arith.constant 0 : index
    %c0_7 = arith.constant 0 : index
    %11 = vector.load %arg3[%c0_6, %c0_7] : memref<96x32xbf16, #tpu.memory_space<vmem>>, vector<96x32xbf16>
    %cst_8 = arith.constant dense<0.000000e+00> : vector<32x32xf32>
    %12 = tpu.matmul %5, %11, %cst_8 {dimension_numbers = #tpu.dot_dimension_numbers<[1], [0], [0], [1], [0, 0, 1, 1], [], []>} : vector<32x96xbf16>, vector<96x32xbf16>, vector<32x32xf32> -> vector<32x32xf32>
    %c0_9 = arith.constant 0 : index
    %c0_10 = arith.constant 0 : index
    %13 = vector.load %arg6[%c0_9, %c0_10] : memref<1x32xf32, #tpu.memory_space<vmem>>, vector<1x32xf32>
    %14 = vector.broadcast %13 : vector<1x32xf32> to vector<32x32xf32>
    %15 = arith.addf %12, %14 : vector<32x32xf32>
    %c0_11 = arith.constant 0 : index
    %c0_12 = arith.constant 0 : index
    %16 = vector.load %arg4[%c0_11, %c0_12] : memref<96x32xbf16, #tpu.memory_space<vmem>>, vector<96x32xbf16>
    %cst_13 = arith.constant dense<0.000000e+00> : vector<32x32xf32>
    %17 = tpu.matmul %5, %16, %cst_13 {dimension_numbers = #tpu.dot_dimension_numbers<[1], [0], [0], [1], [0, 0, 1, 1], [], []>} : vector<32x96xbf16>, vector<96x32xbf16>, vector<32x32xf32> -> vector<32x32xf32>
    %c0_14 = arith.constant 0 : index
    %c0_15 = arith.constant 0 : index
    %18 = vector.load %arg7[%c0_14, %c0_15] : memref<1x32xf32, #tpu.memory_space<vmem>>, vector<1x32xf32>
    %19 = vector.broadcast %18 : vector<1x32xf32> to vector<32x32xf32>
    %20 = arith.addf %17, %19 : vector<32x32xf32>
    %21 = arith.truncf %10 : vector<32x32xf32> to vector<32x32xbf16>
    %22 = vector.shape_cast %21 : vector<32x32xbf16> to vector<4x8x4x8xbf16>
    %23 = tpu.transpose %22, [0, 2, 1, 3] : vector<4x8x4x8xbf16> -> vector<4x4x8x8xbf16>
    %24 = vector.shape_cast %23 : vector<4x4x8x8xbf16> to vector<16x8x8xbf16>
    %25 = arith.truncf %15 : vector<32x32xf32> to vector<32x32xbf16>
    %26 = vector.shape_cast %25 : vector<32x32xbf16> to vector<4x8x4x8xbf16>
    %27 = tpu.transpose %26, [0, 2, 1, 3] : vector<4x8x4x8xbf16> -> vector<4x4x8x8xbf16>
    %28 = vector.shape_cast %27 : vector<4x4x8x8xbf16> to vector<16x8x8xbf16>
    %29 = arith.truncf %20 : vector<32x32xf32> to vector<32x32xbf16>
    %30 = vector.shape_cast %29 : vector<32x32xbf16> to vector<4x8x4x8xbf16>
    %31 = tpu.transpose %30, [0, 2, 1, 3] : vector<4x8x4x8xbf16> -> vector<4x4x8x8xbf16>
    %32 = vector.shape_cast %31 : vector<4x4x8x8xbf16> to vector<16x8x8xbf16>
    "tpu.trace_start"() <{level = 10 : i32, message = "znd,zmd->znm"}> : () -> ()
    %cst_16 = arith.constant dense<0.000000e+00> : vector<16x8x8xf32>
    %33 = tpu.matmul %24, %28, %cst_16 {dimension_numbers = #tpu.dot_dimension_numbers<[2], [2], [1], [1], [0, 0, 0, 1, 1, 1], [0], [0]>} : vector<16x8x8xbf16>, vector<16x8x8xbf16>, vector<16x8x8xf32> -> vector<16x8x8xf32>
    "tpu.trace_stop"() : () -> ()
    %cst_17 = arith.constant dense<0xFF800000> : vector<16x8xf32>
    %34 = vector.multi_reduction <maximumf>, %33, %cst_17 [2] : vector<16x8x8xf32> to vector<16x8xf32>
    %35 = vector.shape_cast %34 : vector<16x8xf32> to vector<16x8x1xf32>
    %36 = vector.broadcast %35 : vector<16x8x1xf32> to vector<16x8x8xf32>
    %37 = arith.subf %33, %36 : vector<16x8x8xf32>
    %38 = math.exp %37 : vector<16x8x8xf32>
    %cst_18 = arith.constant dense<0.000000e+00> : vector<16x8xf32>
    %39 = vector.multi_reduction <add>, %38, %cst_18 [2] : vector<16x8x8xf32> to vector<16x8xf32>
    %40 = vector.shape_cast %39 : vector<16x8xf32> to vector<16x8x1xf32>
    %41 = arith.truncf %38 : vector<16x8x8xf32> to vector<16x8x8xbf16>
    "tpu.trace_start"() <{level = 10 : i32, message = "znm,zmd->znd"}> : () -> ()
    %cst_19 = arith.constant dense<0.000000e+00> : vector<16x8x8xf32>
    %42 = tpu.matmul %41, %32, %cst_19 {dimension_numbers = #tpu.dot_dimension_numbers<[2], [1], [1], [2], [0, 0, 0, 1, 1, 2], [0], [0]>} : vector<16x8x8xbf16>, vector<16x8x8xbf16>, vector<16x8x8xf32> -> vector<16x8x8xf32>
    "tpu.trace_stop"() : () -> ()
    %43 = tpu.reciprocal %40 {approx = true} : vector<16x8x1xf32> -> vector<16x8x1xf32>
    %44 = vector.broadcast %43 : vector<16x8x1xf32> to vector<16x8x8xf32>
    %45 = arith.mulf %42, %44 : vector<16x8x8xf32>
    %46 = arith.truncf %45 : vector<16x8x8xf32> to vector<16x8x8xbf16>
    %47 = vector.shape_cast %46 : vector<16x8x8xbf16> to vector<4x4x8x8xbf16>
    %48 = tpu.transpose %47, [0, 2, 1, 3] : vector<4x4x8x8xbf16> -> vector<4x8x4x8xbf16>
    %49 = vector.shape_cast %48 : vector<4x8x4x8xbf16> to vector<4x8x32xbf16>
    %cst_20 = arith.constant 0.000000e+00 : bf16
    %50 = vector.broadcast %cst_20 : bf16 to vector<4x1x32xbf16>
    %c0_21 = arith.constant 0 : index
    %c0_22 = arith.constant 0 : index
    %c0_23 = arith.constant 0 : index
    %51 = vector.load %arg11[%c0_21, %c0_22, %c0_23] : memref<4x10x32xbf16, #tpu.memory_space<vmem>>, vector<4x1x32xbf16>
    tpu.vector_store %arg11[%c0_21, %c0_22, %c0_23], %50 {strides = array<i32>} : memref<4x10x32xbf16, #tpu.memory_space<vmem>>, vector<4x1x32xbf16>,
    %c0_24 = arith.constant 0 : index
    %c9 = arith.constant 9 : index
    %c0_25 = arith.constant 0 : index
    %52 = vector.load %arg11[%c0_24, %c9, %c0_25] : memref<4x10x32xbf16, #tpu.memory_space<vmem>>, vector<4x1x32xbf16>
    tpu.vector_store %arg11[%c0_24, %c9, %c0_25], %50 {strides = array<i32>} : memref<4x10x32xbf16, #tpu.memory_space<vmem>>, vector<4x1x32xbf16>,
    %c0_26 = arith.constant 0 : index
    %c1 = arith.constant 1 : index
    %c0_27 = arith.constant 0 : index
    %53 = vector.load %arg11[%c0_26, %c1, %c0_27] : memref<4x10x32xbf16, #tpu.memory_space<vmem>>, vector<4x8x32xbf16>
    tpu.vector_store %arg11[%c0_26, %c1, %c0_27], %49 {strides = array<i32>} : memref<4x10x32xbf16, #tpu.memory_space<vmem>>, vector<4x8x32xbf16>,
    %c0_28 = arith.constant 0 : index
    %c0_29 = arith.constant 0 : index
    %c0_30 = arith.constant 0 : index
    %54 = vector.load %arg11[%c0_28, %c0_29, %c0_30] : memref<4x10x32xbf16, #tpu.memory_space<vmem>>, vector<4x10x32xbf16>
    %55 = vector.extract_strided_slice %54 {offsets = [0, 0, 0], sizes = [4, 8, 32], strides = [1, 1, 1]} : vector<4x10x32xbf16> to vector<4x8x32xbf16>
    %56 = vector.extract_strided_slice %54 {offsets = [0, 1, 0], sizes = [4, 8, 32], strides = [1, 1, 1]} : vector<4x10x32xbf16> to vector<4x8x32xbf16>
    %57 = vector.extract_strided_slice %54 {offsets = [0, 2, 0], sizes = [4, 8, 32], strides = [1, 1, 1]} : vector<4x10x32xbf16> to vector<4x8x32xbf16>
    %58 = tpu.concatenate %55, %56, %57 in 2 : vector<4x8x32xbf16>, vector<4x8x32xbf16>, vector<4x8x32xbf16> -> vector<4x8x96xbf16>
    %59 = vector.shape_cast %58 : vector<4x8x96xbf16> to vector<32x96xbf16>
    %c0_31 = arith.constant 0 : index
    %c0_32 = arith.constant 0 : index
    %60 = vector.load %arg8[%c0_31, %c0_32] : memref<96x32xbf16, #tpu.memory_space<vmem>>, vector<96x32xbf16>
    %cst_33 = arith.constant dense<0.000000e+00> : vector<32x32xf32>
    %61 = tpu.matmul %59, %60, %cst_33 {dimension_numbers = #tpu.dot_dimension_numbers<[1], [0], [0], [1], [0, 0, 1, 1], [], []>} : vector<32x96xbf16>, vector<96x32xbf16>, vector<32x32xf32> -> vector<32x32xf32>
    %c0_34 = arith.constant 0 : index
    %c0_35 = arith.constant 0 : index
    %62 = vector.load %arg9[%c0_34, %c0_35] : memref<1x32xf32, #tpu.memory_space<vmem>>, vector<1x32xf32>
    %63 = vector.broadcast %62 : vector<1x32xf32> to vector<32x32xf32>
    %64 = arith.addf %61, %63 : vector<32x32xf32>
    %65 = vector.shape_cast %64 : vector<32x32xf32> to vector<4x8x32xf32>
    %c0_36 = arith.constant 0 : index
    %c0_37 = arith.constant 0 : index
    %c0_38 = arith.constant 0 : index
    %66 = vector.load %arg10[%c0_36, %c0_37, %c0_38] : memref<4x8x32xf32, #tpu.memory_space<vmem>>, vector<4x8x32xf32>
    tpu.vector_store %arg10[%c0_36, %c0_37, %c0_38], %65 {strides = array<i32>} : memref<4x8x32xf32, #tpu.memory_space<vmem>>, vector<4x8x32xf32>,
    return
  }
  func.func @transform_0(%arg0: i32) -> (i32, i32, i32) {
    %c0_i32 = arith.constant 0 : i32
    %c0_i32_0 = arith.constant 0 : i32
    %c0_i32_1 = arith.constant 0 : i32
    return %arg0, %c0_i32, %c0_i32_0 : i32, i32, i32
  }
  func.func @transform_1(%arg0: i32) -> (i32, i32) {
    %c0_i32 = arith.constant 0 : i32
    %c0_i32_0 = arith.constant 0 : i32
    %c0_i32_1 = arith.constant 0 : i32
    return %c0_i32, %c0_i32_0 : i32, i32
  }
  func.func @transform_2(%arg0: i32) -> (i32, i32) {
    %c0_i32 = arith.constant 0 : i32
    %c0_i32_0 = arith.constant 0 : i32
    %c0_i32_1 = arith.constant 0 : i32
    return %c0_i32, %c0_i32_0 : i32, i32
  }
  func.func @transform_3(%arg0: i32) -> (i32, i32) {
    %c0_i32 = arith.constant 0 : i32
    %c0_i32_0 = arith.constant 0 : i32
    %c0_i32_1 = arith.constant 0 : i32
    return %c0_i32, %c0_i32_0 : i32, i32
  }
  func.func @transform_4(%arg0: i32) -> (i32, i32) {
    %c0_i32 = arith.constant 0 : i32
    %c0_i32_0 = arith.constant 0 : i32
    %c0_i32_1 = arith.constant 0 : i32
    return %c0_i32, %c0_i32_0 : i32, i32
  }
  func.func @transform_5(%arg0: i32) -> (i32, i32) {
    %c0_i32 = arith.constant 0 : i32
    %c0_i32_0 = arith.constant 0 : i32
    %c0_i32_1 = arith.constant 0 : i32
    return %c0_i32, %c0_i32_0 : i32, i32
  }
  func.func @transform_6(%arg0: i32) -> (i32, i32) {
    %c0_i32 = arith.constant 0 : i32
    %c0_i32_0 = arith.constant 0 : i32
    %c0_i32_1 = arith.constant 0 : i32
    return %c0_i32, %c0_i32_0 : i32, i32
  }
  func.func @transform_7(%arg0: i32) -> (i32, i32) {
    %c0_i32 = arith.constant 0 : i32
    %c0_i32_0 = arith.constant 0 : i32
    %c0_i32_1 = arith.constant 0 : i32
    return %c0_i32, %c0_i32_0 : i32, i32
  }
  func.func @transform_8(%arg0: i32) -> (i32, i32) {
    %c0_i32 = arith.constant 0 : i32
    %c0_i32_0 = arith.constant 0 : i32
    %c0_i32_1 = arith.constant 0 : i32
    return %c0_i32, %c0_i32_0 : i32, i32
  }
  func.func @transform_9(%arg0: i32) -> (i32, i32, i32) {
    %c0_i32 = arith.constant 0 : i32
    %c0_i32_0 = arith.constant 0 : i32
    %c0_i32_1 = arith.constant 0 : i32
    return %arg0, %c0_i32, %c0_i32_0 : i32, i32, i32
  }
}

</mosaic_0001>

<bundles_post_ra>
// kernel: tpu_custom_call.1
= control target key start
LH: loop header
LB: loop body
LE: loop exit
PB: predicated region body
PF: predicated region fallthrough
CT: control target
= control target key end

     0   :  { %14 = vsyncpa [#allocation4], 0  ;;  %s7233_s0 = inlined_call_operand.vmem [shape: bf16[16,10,32], index: 0, kind: input, shape index: {}]   ;;  %s7234_s1 = inlined_call_operand.vmem [shape: bf16[96,32], index: 1, kind: input, shape index: {}]   ;;  %s7235_s2 = inlined_call_operand.vmem [shape: bf16[96,32], index: 2, kind: input, shape index: {}]   ;;  %s7236_s3 = inlined_call_operand.vmem [shape: bf16[96,32], index: 3, kind: input, shape index: {}]   ;;  %s7237_s4 = inlined_call_operand.vmem [shape: f32[1,32], index: 4, kind: input, shape index: {}]   ;;  %s7238_s5 = inlined_call_operand.vmem [shape: f32[1,32], index: 5, kind: input, shape index: {}]   ;;  %s7239_s6 = inlined_call_operand.vmem [shape: f32[1,32], index: 6, kind: input, shape index: {}]   ;;  %s7240_s7 = inlined_call_operand.vmem [shape: bf16[96,32], index: 7, kind: input, shape index: {}]   ;;  %s7241_s8 = inlined_call_operand.vmem [shape: f32[1,32], index: 8, kind: input, shape index: {}]   ;;  %s7242_s9 = inlined_call_operand.hbm [shape: f32[16,8,32], index: 9, kind: output, shape index: {}]  }
   0x1   :  { %16 = vsyncpa [#allocation4 + $0x1], 0  ;;  %s5973_s30 = smov 0   ;;  %s5975_s10 = smov 0  }
   0x2   :  { %s5977_s11 = smov 0   ;;  %s5979_s12 = smov 0  }
   0x3 LB: > { %s5994_s13 = sadd.s32 4294967295, %s5906_s12   ;;  %s5222_s14 = sadd.s32 4294967294, %s5906_s12   ;;  %s5906_s12 = sphi %s5979_s12, %s7254_s12   ;;  %s5902_s11 = sphi %s5977_s11, %s7253_s11   ;;  %s5898_s10 = sphi %s5975_s10, %s7252_s10   ;;  %s5894_s30 = sphi %s5973_s30, %s7251_s30  }
   0x4   : > { %s5998_s15 = sadd.s32 1, %s5906_s12   ;;  %s223_s16 = sadd.s32 1, %s5902_s11 }
   0x5   : > { %s220_s17 = ssub.s32 %s5906_s12, %s5998_s15  ;;  %p233_p0 = scmp.ne.s32.totalorder %s5902_s11, %s5898_s10 }
   0x6   : > { %p221_p1 = scmp.eq.s32.totalorder %s220_s17, 0  ;;  %p234_p2 = scmp.eq.s32.totalorder %s5994_s13, 3 }
   0x7   : > { %p239_p3 = scmp.ne.s32.totalorder %s5898_s10, %s5894_s30  ;;  %p240_p4 = scmp.eq.s32.totalorder %s5222_s14, 3 }
   0x8   : > { %s6009_s18 = scalar_select %p221_p1, %s5902_s11, %s223_s16  }
   0x9   : > { %p6011_p5 = por %p234_p2, %p233_p0  ;;  %p6015_p6 = por %p240_p4, %p239_p3 }
   0xa   : > { %p5225_p7 = scmp.ge.s32.totalorder %s5906_s12, 1  ;;  %p292_p8 = scmp.lt.s32.totalorder %s5906_s12, 5 }
   0xc   : > { %p293_p9 = pnand %p5225_p7, %p292_p8 }
   0xd   : > { %s5227_s21 = sshll.u32 (!%p293_p9), %s5994_s13, 2  ;;  %s5910_s25 = smov (!%p293_p9), 112  }
   0xe   : > { %296 = sbr.rel (%p293_p9) target bundleno = 1707 (0x6ab), region = 56  ;;  %p330_p10 = scmp.lt.s32.totalorder (!%p293_p9), %s5227_s21, 15 }
   0xf   : > { %s5911_s26 = smov (!%p293_p9), 120   ;;  %s5918_s29 = smov (!%p293_p9), 8  }
  0x10   : > { %s5919_s16 = smov (!%p293_p9), 16   ;;  %s5920_s17 = smov (!%p293_p9), 24  }
  0x13   : > { %v5754_v0 = vld [vmem:[%s7234_s1 + $0x28] sm:$0xff]   ;;  %s7256_s21 = smov (!%p330_p10, %s5227_s21), 15  ;;  %v5756_v2 = vld [vmem:[%s7234_s1 + $0x20] sm:$0xff]   ;;  %v5758_v4 = vld [vmem:[%s7234_s1 + $0x18] sm:$0xff]   ;;  %vm414_vm0 = vcmask 261120   ;;  %vm427_vm1 = vcmask 523264  }
  0x14   : > { %v5755_v1 = vld [vmem:[%s7235_s2 + $0x28] sm:$0xff]   ;;  %5441 = vmatprep.subr.bf16.mxu0 %v5754_v0  ;;  %v5757_v3 = vld [vmem:[%s7235_s2 + $0x20] sm:$0xff]   ;;  %s5343_s14 = sshll.u32 %s7256_s21, 3  ;;  %v5759_v5 = vld [vmem:[%s7235_s2 + $0x18] sm:$0xff]   ;;  %vm501_vm2 = vcmask 785408   ;;  %s5912_s21 = smov 104  }
  0x15   : > { %5457 = vmatprep.subr.bf16.mxu1 %v5755_v1  ;;  %5442 = vmatpush3.bf16.msra.mxu0 %v5754_v0  ;;  %s334_s24 = scalar_lea.vmem %s7233_s0, %s5343_s14  ;;  %v5760_v20 = vld [vmem:[%s7234_s1 + $0x10] sm:$0xff]   ;;  %s5908_s14 = smov 64   ;;  %v5762_v32 = vld [vmem:[%s7234_s1 + $0x8] sm:$0xff]   ;;  %v5764_v40 = vld [vmem:[%s7234_s1] sm:$0xff]   ;;  %vm5914_vm3 = vmmov 0   ;;  %vm2451_vm4 = vcmask 64512  }
  0x16   : > { %5458 = vmatpush3.bf16.msra.mxu1 %v5755_v1  ;;  %5443 = vmatprep.subr.bf16.mxu0 %v5756_v2  ;;  %v6043_v6 = vld [vmem:[%s334_s24 + $0x8] sm:$0xf]  ;;  %v341_v7 = vld [vmem:[%s334_s24 + $0xc] sm:$0x1]  ;;  %v6045_v8 = vld [vmem:[%s334_s24] sm:$0xf] }
  0x17   : > { %5459 = vmatprep.subr.bf16.mxu1 %v5757_v3  ;;  %v5231_v9 = vcombine.low %v6043_v6, %v341_v7  ;;  %v339_v10 = vld [vmem:[%s334_s24 + $0x4] sm:$0x1]  ;;  %v6048_v11 = vld [vmem:[%s334_s24 + $0x10] sm:$0xf]  ;;  %v343_v12 = vld [vmem:[%s334_s24 + $0x14] sm:$0x1] }
  0x18   : > { %v5230_v13 = vcombine.low %v6045_v8, %v339_v10  ;;  %v5232_v14 = vcombine.low %v6048_v11, %v343_v12  ;;  %v6052_v15 = vld [vmem:[%s334_s24 + $0x18] sm:$0xf]  ;;  %v345_v16 = vld [vmem:[%s334_s24 + $0x1c] sm:$0x1]  ;;  %v5761_v21 = vld [vmem:[%s7235_s2 + $0x10] sm:$0xff]   ;;  %s5909_s24 = smov 32  }
  0x19   : > { %5444 = vmatpush3.bf16.msra.mxu0 %v5756_v2  ;;  %v403_v17 = vrot.slane %v5231_v9, 1  ;;  %v5233_v18 = vcombine.low %v6052_v15, %v345_v16  ;;  %v376_v19 = vshll.u32 %v5231_v9, 16  ;;  %v374_v28 = vshrl.u32 %v5231_v9, 16  ;;  %v5763_v36 = vld [vmem:[%s7235_s2 + $0x8] sm:$0xff]   ;;  %v5765_v42 = vld [vmem:[%s7235_s2] sm:$0xff]   ;;  %v5768_v0 = vld [vmem:[%s7236_s3 + $0x18] sm:$0xff]  }
  0x1a   : > { %5460 = vmatpush3.bf16.msra.mxu1 %v5757_v3  ;;  %5445 = vmatprep.subr.bf16.mxu0 %v5758_v4  ;;  %v402_v22 = vrot.slane %v5230_v13, 1  ;;  %v381_v23 = vshrl.u32 %v5232_v14, 16  ;;  %v383_v24 = vshll.u32 %v5232_v14, 16  ;;  %v367_v25 = vshrl.u32 %v5230_v13, 16  ;;  %v5766_v44 = vld [vmem:[%s7236_s3 + $0x28] sm:$0xff]   ;;  %v5767_v63 = vld [vmem:[%s7236_s3 + $0x20] sm:$0xff]  }
  0x1b   : > { %5461 = vmatprep.subr.bf16.mxu1 %v5759_v5  ;;  %408 = vrot.lane.b32.xlu1 %v403_v17, %s5908_s14  ;;  %v369_v26 = vshll.u32 %v5230_v13, 16  ;;  %v390_v27 = vshll.u32 %v5233_v18, 16  ;;  %v388_v30 = vshrl.u32 %v5233_v18, 16  ;;  %v378_v31 = vrot.slane %v376_v19, 1  ;;  %v5769_v1 = vld [vmem:[%s7236_s3 + $0x10] sm:$0xff]   ;;  %v5770_v2 = vld [vmem:[%s7236_s3 + $0x8] sm:$0xff]  }
  0x1c   : > { %406 = vrot.lane.b32.xlu0 %v402_v22, %s5908_s14  ;;  %v385_v29 = vrot.slane %v383_v24, 1  ;;  %v405_v41 = vrot.slane %v5233_v18, 1  ;;  %v404_v43 = vrot.slane %v5232_v14, 1  ;;  %v5771_v3 = vld [vmem:[%s7236_s3] sm:$0xff]   ;;  %vm3351_vm5 = vcmask 1043456  }
  0x1d   : > { %5446 = vmatpush3.bf16.msra.mxu0 %v5758_v4  ;;  %v371_v33 = vrot.slane %v369_v26, 1  ;;  %v392_v34 = vrot.slane %v390_v27, 1  ;;  %v379_v39 = vor.u32 %v378_v31, %v374_v28  ;;  %v5245_v10 = vld [vmem:[%s7238_s5] ss:$0 sm:$0xff]  ;;  %vm4819_vm6 = vcmask 253952  }
  0x1e   : > { %5462 = vmatpush3.bf16.msra.mxu1 %v5759_v5  ;;  %5447 = vmatprep.subr.bf16.mxu0 %v5760_v20  ;;  %v386_v35 = vor.u32 %v385_v29, %v381_v23  ;;  %v5254_v24 = vld [vmem:[%s7239_s6] ss:$0 sm:$0xff]  ;;  %vm4820_vm7 = vsmask.f32 256  ;;  %vm4834_vm9 = vsmask.f32 7938 }
  0x1f   : > { %5463 = vmatprep.subr.bf16.mxu1 %v5761_v21  ;;  %v372_v37 = vor.u32 %v371_v33, %v367_v25  ;;  %v393_v38 = vor.u32 %v392_v34, %v388_v30  ;;  %vm6974_vm8 = vmand %vm4819_vm6, %vm4820_vm7  ;;  %vm4801_vm11 = vcmask 130048   ;;  %vm4810_vm12 = vcmask 195584  }
  0x20   : > { %398 = vrot.lane.b32.xlu1 %v386_v35, %s5909_s24  ;;  %vm6984_vm10 = vmand %vm4819_vm6, %vm4834_vm9  ;;  %vm4900_vm13 = vcmask 257024  }
  0x21   : > { %5448 = vmatpush3.bf16.msra.mxu0 %v5760_v20  ;;  %394 = vrot.lane.b32.xlu0 %v372_v37, %s5909_s24  ;;  %v5913_v37 = vmov 0.0   ;;  %vm7090_vm14 = vmand %vm4900_vm13, %vm4834_vm9 }
  0x22   : > { %5464 = vmatpush3.bf16.msra.mxu1 %v5761_v21  ;;  %5449 = vmatprep.subr.bf16.mxu0 %v5762_v32 }
  0x23   : > { %5465 = vmatprep.subr.bf16.mxu1 %v5763_v36 }
  0x24   : > { %400 = vrot.lane.b32.xlu1 %v393_v38, %s5909_s24 }
  0x25   : > { %5450 = vmatpush3.bf16.msra.mxu0 %v5762_v32  ;;  %396 = vrot.lane.b32.xlu0 %v379_v39, %s5909_s24  ;;  %v5915_v39 = vmov 1983009808  }
  0x26   : > { %5466 = vmatpush3.bf16.msra.mxu1 %v5763_v36  ;;  %5451 = vmatprep.subr.bf16.mxu0 %v5764_v40 }
  0x27   : > { %5467 = vmatprep.subr.bf16.mxu1 %v5765_v42 }
  0x28   : > { %412 = vrot.lane.b32.xlu1 %v405_v41, %s5908_s14  ;;  %v823_v41 = vlaneseq }
  0x29   : > { %5452 = vmatpush3.bf16.msra.mxu0 %v5764_v40  ;;  %410 = vrot.lane.b32.xlu0 %v404_v43, %s5908_s14  ;;  %v821_v40 = vunpack.c.l.s4 %v5915_v39 }
  0x2a   : > { %5468 = vmatpush3.bf16.msra.mxu1 %v5765_v42  ;;  %5473 = vmatprep.subr.bf16.mxu0 %v5766_v44 }
  0x2b   : > { %5495 = vmatprep.subr.bf16.mxu1 %v5913_v37 }
  0x8d   : > { %v409_v45 = vpop.permute.xlu1 %408 }
  0x8e   : > { %v407_v46 = vpop.permute.xlu0 %406 }
  0x92   : > { %v399_v47 = vpop.permute.xlu1 %398 }
  0x93   : > { %v395_v48 = vpop.permute.xlu0 %394  ;;  %v423_v58 = vsel %vm414_vm0, %v6048_v11, %v399_v47  ;;  %v5916_v47 = vmov 0  }
  0x94   : > { %v417_v49 = vsel %vm414_vm0, %v6045_v8, %v395_v48  ;;  %v6176_v48 = vpack.i.b16 %v5916_v47, %v5916_v47 }
  0x95   : > { %v429_v53 = vsel %vm427_vm1, %v417_v49, %v407_v46 }
  0x96   : > { %v401_v50 = vpop.permute.xlu1 %400 }
  0x97   : > { %v397_v51 = vpop.permute.xlu0 %396  ;;  %v426_v55 = vsel %vm414_vm0, %v6052_v15, %v401_v50  ;;  %v5234_v15 = vld [vmem:[%s7237_s4] ss:$0 sm:$0xff]  ;;  %v5917_v50 = vmov 1934713408  }
  0x98   : > { %v420_v52 = vsel %vm414_vm0, %v6043_v6, %v397_v51  ;;  %v852_v51 = vunpack.c.l.s4 %v5917_v50 }
  0x99   : > { %v431_v54 = vsel %vm427_vm1, %v420_v52, %v409_v45  ;;  %v824_v45 = vshrl.u32 %v823_v41, 7 }
  0x9a   : > { %v413_v56 = vpop.permute.xlu1 %412  ;;  %v5235_v57 = vcombine.low %v429_v53, %v431_v54 }
  0x9b   : > { %v435_v59 = vsel %vm427_vm1, %v426_v55, %v413_v56  ;;  %v411_v60 = vpop.permute.xlu0 %410 }
  0x9c   : > { %v433_v61 = vsel %vm427_vm1, %v423_v58, %v411_v60  ;;  %5453 = vmatprep.mubr.msk.bf16.mxu0 %vm501_vm2, %v5235_v57  ;;  %5469 = vmatprep.mubr.msk.bf16.mxu1 %vm501_vm2, %v5235_v57 }
  0x9d   : > { %v5236_v62 = vcombine.low %v433_v61, %v435_v59  ;;  %v853_v59 = vunpack.c.0.s8 %v852_v51 }
  0x9f   : > { %5454 = vmatmul.mubr.msk.bf16.vlgmr.msra.gmra.mxu0 %vm501_vm2, %v5236_v62  ;;  %5470 = vmatmul.mubr.msk.bf16.vlgmr.msra.gmra.mxu1 %vm501_vm2, %v5236_v62 }
  0xa0   : > { %5474 = vmatpush3.bf16.msra.mxu0 %v5766_v44  ;;  %5485 = vmatprep.mubr.msk.bf16.mxu0 %vm501_vm2, %v5235_v57  ;;  %v822_v44 = vunpack.c.0.s8 %v821_v40 }
  0xa1   : > { %5475 = vmatprep.subr.bf16.mxu0 %v5767_v63  ;;  %5497 = vmatprep.mubr.msk.bf16.mxu1 %vm5914_vm3, %v5913_v37 }
  0xa2   : > { %v6179_v53 = vsub.s32 %v822_v44, %v824_v45 }
  0xa4   : > { %5476 = vmatpush3.bf16.msra.mxu0 %v5767_v63 }
  0xa5   : > { %5477 = vmatprep.subr.bf16.mxu0 %v5768_v0 }
  0xa8   : > { %5478 = vmatpush3.bf16.msra.mxu0 %v5768_v0 }
  0xa9   : > { %5479 = vmatprep.subr.bf16.mxu0 %v5769_v1 }
  0xac   : > { %5480 = vmatpush3.bf16.msra.mxu0 %v5769_v1 }
  0xad   : > { %5481 = vmatprep.subr.bf16.mxu0 %v5770_v2 }
  0xb0   : > { %5482 = vmatpush3.bf16.msra.mxu0 %v5770_v2 }
  0xb1   : > { %5483 = vmatprep.subr.bf16.mxu0 %v5771_v3 }
  0xb4   : > { %5484 = vmatpush3.bf16.msra.mxu0 %v5771_v3  ;;  %v6188_v3 = vsub.s32 %v853_v59, %v824_v45 }
  0xb5   : > { %5489 = vmatprep.subr.bf16.mxu0 %v5913_v37 }
  0xb7   : > { %5486 = vmatmul.mubr.msk.bf16.vlgmr.msra.gmra.mxu0 %vm501_vm2, %v5236_v62 }
  0xb8   : > { %5491 = vmatprep.mubr.msk.bf16.mxu0 %vm5914_vm3, %v5913_v37 }
 0x15f   : > { %v5455_v4 = vpop.f32.mrf.mxu0  ;;  %v5471_v5 = vpop.f32.mrf.mxu1 }
 0x160   : > { %v655_v21 = vadd.f32 %v5471_v5, %v5245_v10  ;;  %v551_v25 = vadd.f32 %v5455_v4, %v5234_v15 }
 0x161   : > { %v542_v6 = vpop.f32.mrf.mxu0  ;;  %v646_v7 = vpop.f32.mrf.mxu1 }
 0x162   : > { %v647_v13 = vadd.f32 %v5245_v10, %v646_v7  ;;  %v543_v18 = vadd.f32 %v5234_v15, %v542_v6 }
 0x163   : > { %v5456_v8 = vpop.f32.mrf.mxu0  ;;  %v5472_v9 = vpop.f32.mrf.mxu1 }
 0x164   : > { %v658_v20 = vadd.f32 %v5472_v9, %v5245_v10  ;;  %v554_v22 = vadd.f32 %v5456_v8, %v5234_v15 }
 0x165   : > { %v545_v11 = vpop.f32.mrf.mxu0  ;;  %v649_v12 = vpop.f32.mrf.mxu1 }
 0x166   : > { %v650_v14 = vadd.f32 %v5245_v10, %v649_v12  ;;  %v546_v16 = vadd.f32 %v5234_v15, %v545_v11  ;;  %v6139_v23 = vpack.c.bf16 %v658_v20, %v655_v21  ;;  %v6148_v27 = vpack.c.bf16 %v554_v22, %v551_v25 }
 0x168   : > { %v6123_v17 = vpack.c.bf16 %v650_v14, %v647_v13  ;;  %v6129_v19 = vpack.c.bf16 %v546_v16, %v543_v18 }
 0x16a   : > { %1339 = vrot.lane.b32.xlu1 %v6123_v17, %s5910_s25  ;;  %1335 = vrot.lane.b32.xlu0 %v6123_v17, %s5911_s26  ;;  %v1351_v61 = vshrl.u32 %v6123_v17, 16 }
 0x16e   : > { %1343 = vrot.lane.b32.xlu0 %v6123_v17, %s5912_s21  ;;  %769 = vrot.lane.b32.xlu1 %v6129_v19, %s5911_s26 }
 0x172   : > { %773 = vrot.lane.b32.xlu0 %v6129_v19, %s5910_s25  ;;  %777 = vrot.lane.b32.xlu1 %v6129_v19, %s5912_s21 }
 0x176   : > { %1337 = vrot.lane.b32.xlu0 %v6139_v23, %s5911_s26  ;;  %1341 = vrot.lane.b32.xlu1 %v6139_v23, %s5910_s25 }
 0x177   : > { %v5487_v26 = vpop.f32.mrf.mxu0 }
 0x178   : > { %v759_v28 = vadd.f32 %v5487_v26, %v5254_v24 }
 0x179   : > { %v750_v29 = vpop.f32.mrf.mxu0 }
 0x17a   : > { %1345 = vrot.lane.b32.xlu0 %v6139_v23, %s5912_s21  ;;  %771 = vrot.lane.b32.xlu1 %v6148_v27, %s5911_s26  ;;  %v751_v33 = vadd.f32 %v5254_v24, %v750_v29 }
 0x17b   : > { %v5488_v30 = vpop.f32.mrf.mxu0 }
 0x17c   : > { %v762_v31 = vadd.f32 %v5488_v30, %v5254_v24 }
 0x17d   : > { %v753_v32 = vpop.f32.mrf.mxu0 }
 0x17e   : > { %v6154_v34 = vpack.c.bf16 %v762_v31, %v759_v28  ;;  %v754_v35 = vadd.f32 %v5254_v24, %v753_v32  ;;  %775 = vrot.lane.b32.xlu0 %v6148_v27, %s5910_s25  ;;  %779 = vrot.lane.b32.xlu1 %v6148_v27, %s5912_s21  ;;  %v785_v24 = vshrl.u32 %v6129_v19, 16 }
 0x180   : > { %v6160_v36 = vpack.c.bf16 %v754_v35, %v751_v33  ;;  %v1367_v33 = vshrl.u32 %v6139_v23, 16 }
 0x182   : > { %1895 = vrot.lane.b32.xlu0 %v6160_v36, %s5911_s26  ;;  %1899 = vrot.lane.b32.xlu1 %v6160_v36, %s5910_s25 }
 0x186   : > { %1903 = vrot.lane.b32.xlu0 %v6160_v36, %s5912_s21 }
 0x1dc   : > { %v1336_v38 = vpop.permute.xlu0 %1335  ;;  %v1340_v43 = vpop.permute.xlu1 %1339 }
 0x1dd   : > { %v1349_v49 = vpack.i.b16 %v1336_v38, %v6123_v17  ;;  %v1359_v55 = vshrl.u32 %v1340_v43, 16  ;;  %v1352_v56 = vshrl.u32 %v1336_v38, 16 }
 0x1df   : > { %v1379_v58 = vcombine.high %v1349_v49, %v6176_v48  ;;  %v1386_v63 = vrot.slane %v1349_v49, %v6179_v53  ;;  %v1353_v1 = vpack.i.b16 %v1352_v56, %v1351_v61  ;;  %v807_v49 = vshrl.u32 %v6148_v27, 16 }
 0x1e0   : > { %v1344_v42 = vpop.permute.xlu0 %1343  ;;  %v770_v57 = vpop.permute.xlu1 %769 }
 0x1e1   : > { %v1357_v46 = vpack.i.b16 %v1344_v42, %v1340_v43  ;;  %v1360_v52 = vshrl.u32 %v1344_v42, 16  ;;  %v1393_v2 = vrot.slane %v1379_v58, %v6179_v53  ;;  %v1445_v12 = vcombine.high %v1353_v1, %v6176_v48 }
 0x1e2   : > { %v1452_v13 = vrot.slane %v1353_v1, %v6179_v53  ;;  %v783_v14 = vpack.i.b16 %v770_v57, %v6129_v19  ;;  %v786_v17 = vshrl.u32 %v770_v57, 16 }
 0x1e3   : > { %v1394_v54 = vcombine.high %v1357_v46, %v6176_v48  ;;  %v1401_v60 = vrot.slane %v1357_v46, %v6179_v53  ;;  %v1361_v62 = vpack.i.b16 %v1360_v52, %v1359_v55  ;;  %v1459_v31 = vrot.slane %v1445_v12, %v6179_v53 }
 0x1e4   : > { %v774_v6 = vpop.permute.xlu0 %773  ;;  %v778_v9 = vpop.permute.xlu1 %777  ;;  %v819_v32 = vcombine.high %v783_v14, %v6176_v48  ;;  %v787_v39 = vpack.i.b16 %v786_v17, %v785_v24  ;;  %v826_v50 = vrot.slane %v783_v14, %v6179_v53 }
 0x1e5   : > { %v1408_v0 = vrot.slane %v1394_v54, %v6179_v53  ;;  %v1409_v4 = vcombine.low %v1386_v63, %v1401_v60  ;;  %v1410_v5 = vcombine.high %v1386_v63, %v1401_v60  ;;  %v1460_v7 = vcombine.high %v1361_v62, %v6176_v48 }
 0x1e6   : > { %v1467_v8 = vrot.slane %v1361_v62, %v6179_v53  ;;  %v791_v18 = vpack.i.b16 %v778_v9, %v774_v6  ;;  %v793_v28 = vshrl.u32 %v774_v6, 16  ;;  %v794_v29 = vshrl.u32 %v778_v9, 16 }
 0x1e7   : > { %v1425_v10 = vcombine.low %v1393_v2, %v1408_v0  ;;  %v1426_v11 = vcombine.high %v1393_v2, %v1408_v0  ;;  %v1417_v15 = vrot.slane %v1409_v4, %v6188_v3  ;;  %v1424_v16 = vrot.slane %v1410_v5, %v6188_v3 }
 0x1e8   : > { %v1474_v20 = vrot.slane %v1460_v7, %v6179_v53  ;;  %v1475_v21 = vcombine.low %v1452_v13, %v1467_v8  ;;  %v1476_v22 = vcombine.high %v1452_v13, %v1467_v8  ;;  %v6201_v30 = vpop.permute.xlu0 %1337  ;;  %v834_v40 = vcombine.high %v791_v18, %v6176_v48  ;;  %v1342_v5 = vpop.permute.xlu1 %1341 }
 0x1e9   : > { %v1433_v25 = vrot.slane %v1425_v10, %v6188_v3  ;;  %v1440_v26 = vrot.slane %v1426_v11, %v6188_v3  ;;  %v1643_v35 = vcombine.low %v1417_v15, %v1424_v16  ;;  %v5271_v38 = vcombine.high %v1417_v15, %v1424_v16 }
 0x1ea   : > { %v1483_v19 = vrot.slane %v1475_v21, %v6188_v3  ;;  %v1490_v41 = vrot.slane %v1476_v22, %v6188_v3  ;;  %v1491_v42 = vcombine.low %v1459_v31, %v1474_v20  ;;  %v1492_v43 = vcombine.high %v1459_v31, %v1474_v20 }
 0x1eb   : > { %v1693_v44 = vcombine.low %v1433_v25, %v1440_v26  ;;  %v5273_v45 = vcombine.high %v1433_v25, %v1440_v26  ;;  %v795_v46 = vpack.i.b16 %v794_v29, %v793_v28  ;;  %v833_v51 = vrot.slane %v819_v32, %v6179_v53 }
 0x1ec   : > { %v841_v52 = vrot.slane %v791_v18, %v6179_v53  ;;  %v1911_v54 = vshrl.u32 %v6160_v36, 16  ;;  %v6215_v55 = vrot.slane %v1643_v35, %v6179_v53  ;;  %v885_v56 = vcombine.high %v787_v39, %v6176_v48  ;;  %v1346_v59 = vpop.permute.xlu0 %1345 }
 0x1ed   : > { %v892_v57 = vrot.slane %v787_v39, %v6179_v53  ;;  %v848_v58 = vrot.slane %v834_v40, %v6179_v53  ;;  %v1499_v60 = vrot.slane %v1491_v42, %v6188_v3  ;;  %v1506_v61 = vrot.slane %v1492_v43, %v6188_v3 }
 0x1ee   : > { %v6223_v62 = vrot.slane %v5271_v38, %v6179_v53  ;;  %v1668_v63 = vcombine.low %v1483_v19, %v1490_v41  ;;  %v5272_v0 = vcombine.high %v1483_v19, %v1490_v41  ;;  %v6226_v1 = vrot.slane %v1693_v44, %v6179_v53 }
 0x1ef   : > { %v6229_v2 = vrot.slane %v5273_v45, %v6179_v53  ;;  %v900_v4 = vcombine.high %v795_v46, %v6176_v48  ;;  %v849_v6 = vcombine.low %v826_v50, %v841_v52  ;;  %v850_v7 = vcombine.high %v826_v50, %v841_v52 }
 0x1f0   : > { %v1365_v8 = vpack.i.b16 %v6201_v30, %v6139_v23  ;;  %v1373_v9 = vpack.i.b16 %v1346_v59, %v1342_v5  ;;  %v899_v10 = vrot.slane %v885_v56, %v6179_v53  ;;  %v865_v11 = vcombine.low %v833_v51, %v848_v58 }
 0x1f1   : > { %v866_v12 = vcombine.high %v833_v51, %v848_v58  ;;  %v1376_v13 = vshrl.u32 %v1346_v59, 16  ;;  %v6236_v14 = vrot.slane %v1668_v63, %v6179_v53  ;;  %v1718_v15 = vcombine.low %v1499_v60, %v1506_v61 }
 0x1f2   : > { %v5274_v16 = vcombine.high %v1499_v60, %v1506_v61  ;;  %v907_v17 = vrot.slane %v795_v46, %v6179_v53  ;;  %v6240_v18 = vrot.slane %v5272_v0, %v6179_v53  ;;  %v914_v20 = vrot.slane %v900_v4, %v6179_v53 }
 0x1f3   : > { %v1368_v23 = vshrl.u32 %v6201_v30, 16  ;;  %v1375_v21 = vshrl.u32 %v1342_v5, 16  ;;  %v857_v22 = vrot.slane %v849_v6, %v6188_v3  ;;  %v864_v24 = vrot.slane %v850_v7, %v6188_v3 }
 0x1f4   : > { %v1511_v25 = vcombine.high %v1365_v8, %v6176_v48  ;;  %v1526_v26 = vcombine.high %v1373_v9, %v6176_v48  ;;  %v873_v28 = vrot.slane %v865_v11, %v6188_v3  ;;  %v880_v29 = vrot.slane %v866_v12, %v6188_v3  ;;  %v772_v12 = vpop.permute.xlu1 %771 }
 0x1f5   : > { %v1377_v31 = vpack.i.b16 %v1376_v13, %v1375_v21  ;;  %v1533_v32 = vrot.slane %v1373_v9, %v6179_v53  ;;  %v6252_v35 = vrot.slane %v1718_v15, %v6179_v53  ;;  %v6255_v30 = vrot.slane %v5274_v16, %v6179_v53 }
 0x1f6   : > { %v915_v38 = vcombine.low %v892_v57, %v907_v17  ;;  %v916_v39 = vcombine.high %v892_v57, %v907_v17  ;;  %v931_v40 = vcombine.low %v899_v10, %v914_v20  ;;  %v932_v19 = vcombine.high %v899_v10, %v914_v20 }
 0x1f7   : > { %v1369_v41 = vpack.i.b16 %v1368_v23, %v1367_v33  ;;  %v1518_v42 = vrot.slane %v1365_v8, %v6179_v53  ;;  %v1083_v43 = vcombine.low %v857_v22, %v864_v24  ;;  %v5263_v44 = vcombine.high %v857_v22, %v864_v24 }
 0x1f8   : > { %v1525_v45 = vrot.slane %v1511_v25, %v6179_v53  ;;  %v1540_v46 = vrot.slane %v1526_v26, %v6179_v53  ;;  %v1133_v50 = vcombine.low %v873_v28, %v880_v29  ;;  %v1592_v56 = vcombine.high %v1377_v31, %v6176_v48 }
 0x1f9   : > { %v1541_v51 = vcombine.low %v1518_v42, %v1533_v32  ;;  %v1542_v52 = vcombine.high %v1518_v42, %v1533_v32  ;;  %v923_v58 = vrot.slane %v915_v38, %v6188_v3  ;;  %v930_v57 = vrot.slane %v916_v39, %v6188_v3 }
 0x1fa   : > { %v5265_v59 = vcombine.high %v873_v28, %v880_v29  ;;  %v1599_v33 = vrot.slane %v1377_v31, %v6179_v53  ;;  %v939_v60 = vrot.slane %v931_v40, %v6188_v3  ;;  %v946_v61 = vrot.slane %v932_v19, %v6188_v3  ;;  %v6278_v29 = vpop.permute.xlu0 %775 }
 0x1fb   : > { %v1577_v63 = vcombine.high %v1369_v41, %v6176_v48  ;;  %v1584_v0 = vrot.slane %v1369_v41, %v6179_v53  ;;  %v1090_v4 = vrot.slane %v1083_v43, %v6179_v53  ;;  %v1098_v5 = vrot.slane %v5263_v44, %v6179_v53 }
 0x1fc   : > { %v1557_v6 = vcombine.low %v1525_v45, %v1540_v46  ;;  %v1558_v7 = vcombine.high %v1525_v45, %v1540_v46  ;;  %v1140_v8 = vrot.slane %v1133_v50, %v6179_v53  ;;  %v1549_v9 = vrot.slane %v1541_v51, %v6188_v3 }
 0x1fd   : > { %v1556_v10 = vrot.slane %v1542_v52, %v6188_v3  ;;  %v1606_v11 = vrot.slane %v1592_v56, %v6179_v53  ;;  %v1108_v13 = vcombine.low %v923_v58, %v930_v57  ;;  %v1148_v15 = vrot.slane %v5265_v59, %v6179_v53 }
 0x1fe   : > { %v1607_v16 = vcombine.low %v1584_v0, %v1599_v33  ;;  %v1608_v17 = vcombine.high %v1584_v0, %v1599_v33  ;;  %v5264_v20 = vcombine.high %v923_v58, %v930_v57  ;;  %v1158_v23 = vcombine.low %v939_v60, %v946_v61  ;;  %v780_v58 = vpop.permute.xlu1 %779 }
 0x1ff   : > { %v5266_v21 = vcombine.high %v939_v60, %v946_v61  ;;  %v1591_v22 = vrot.slane %v1577_v63, %v6179_v53  ;;  %v1099_v24 = vcombine.low %v1090_v4, %v1098_v5  ;;  %v1565_v25 = vrot.slane %v1557_v6, %v6188_v3  ;;  %v1896_v4 = vpop.permute.xlu0 %1895 }
 0x200   : > { %v1572_v26 = vrot.slane %v1558_v7, %v6188_v3  ;;  %v808_v28 = vshrl.u32 %v772_v12, 16  ;;  %v1743_v38 = vcombine.low %v1549_v9, %v1556_v10  ;;  %v5275_v39 = vcombine.high %v1549_v9, %v1556_v10 }
 0x201   : > { %v1623_v31 = vcombine.low %v1591_v22, %v1606_v11  ;;  %v1624_v32 = vcombine.high %v1591_v22, %v1606_v11  ;;  %v6281_v40 = vrot.slane %v1108_v13, %v6179_v53  ;;  %v1149_v19 = vcombine.low %v1140_v8, %v1148_v15 }
 0x202   : > { %v1615_v41 = vrot.slane %v1607_v16, %v6188_v3  ;;  %v1622_v42 = vrot.slane %v1608_v17, %v6188_v3  ;;  %v6286_v43 = vrot.slane %v5264_v20, %v6179_v53  ;;  %v6289_v44 = vrot.slane %v1158_v23, %v6179_v53  ;;  %v1900_v16 = vpop.permute.xlu1 %1899 }
 0x203   : > { %v6292_v45 = vrot.slane %v5266_v21, %v6179_v53  ;;  %v805_v46 = vpack.i.b16 %v772_v12, %v6148_v27  ;;  %v6296_v50 = vrot.slane %v1099_v24, %v6188_v3  ;;  %v1793_v51 = vcombine.low %v1565_v25, %v1572_v26 }
 0x204   : > { %v5277_v52 = vcombine.high %v1565_v25, %v1572_v26  ;;  %v809_v56 = vpack.i.b16 %v808_v28, %v807_v49  ;;  %v1631_v57 = vrot.slane %v1623_v31, %v6188_v3  ;;  %v1638_v59 = vrot.slane %v1624_v32, %v6188_v3  ;;  %v1904_v31 = vpop.permute.xlu0 %1903 }
 0x205   : > { %v6303_v33 = vrot.slane %v1743_v38, %v6179_v53  ;;  %v6306_v60 = vrot.slane %v5275_v39, %v6179_v53  ;;  %v6309_v61 = vrot.slane %v1149_v19, %v6188_v3  ;;  %v1768_v63 = vcombine.low %v1615_v41, %v1622_v42 }
 0x206   : > { %v5276_v0 = vcombine.high %v1615_v41, %v1622_v42  ;;  %v1659_v27 = vcombine.low %v6215_v55, %v6223_v62  ;;  %v1124_v49 = vcombine.low %v6281_v40, %v6286_v43  ;;  %v1174_v5 = vcombine.low %v6289_v44, %v6292_v45 }
 0x207   : > { %v951_v6 = vcombine.high %v805_v46, %v6176_v48  ;;  %v1684_v7 = vcombine.low %v6236_v14, %v6240_v18  ;;  %v6321_v8 = vrot.slane %v1793_v51, %v6179_v53  ;;  %v6324_v9 = vrot.slane %v5277_v52, %v6179_v53 }
 0x208   : > { %v1017_v10 = vcombine.high %v809_v56, %v6176_v48  ;;  %v813_v55 = vpack.i.b16 %v780_v58, %v6278_v29  ;;  %v1759_v62 = vcombine.low %v6303_v33, %v6306_v60  ;;  %v1818_v11 = vcombine.low %v1631_v57, %v1638_v59 }
 0x209   : > { %v5278_v12 = vcombine.high %v1631_v57, %v1638_v59  ;;  %v6331_v13 = vrot.slane %v805_v46, %v6179_v53  ;;  %v6334_v14 = vrot.slane %v1768_v63, %v6179_v53  ;;  %v6337_v18 = vrot.slane %v5276_v0, %v6179_v53 }
 0x20a   : > { %v1912_v15 = vshrl.u32 %v1896_v4, 16  ;;  %v1666_v17 = vrot.slane %v1659_v27, %v6188_v3  ;;  %v6341_v20 = vrot.slane %v951_v6, %v6179_v53  ;;  %v6344_v23 = vrot.slane %v809_v56, %v6179_v53 }
 0x20b   : > { %v1909_v21 = vpack.i.b16 %v1896_v4, %v6160_v36  ;;  %v1691_v22 = vrot.slane %v1684_v7, %v6188_v3  ;;  %v6349_v24 = vrot.slane %v1017_v10, %v6179_v53  ;;  %v815_v25 = vshrl.u32 %v6278_v29, 16 }
 0x20c   : > { %v816_v26 = vshrl.u32 %v780_v58, 16  ;;  %v966_v28 = vcombine.high %v813_v55, %v6176_v48  ;;  %v6354_v32 = vrot.slane %v1818_v11, %v6179_v53  ;;  %v6357_v38 = vrot.slane %v5278_v12, %v6179_v53 }
 0x20d   : > { %v1919_v39 = vshrl.u32 %v1900_v16, 16  ;;  %v1845_v40 = vpack.i.b16 %v1691_v22, %v1666_v17  ;;  %v973_v19 = vrot.slane %v813_v55, %v6179_v53  ;;  %v1913_v41 = vpack.i.b16 %v1912_v15, %v1911_v54 }
 0x20e   : > { %v1846_v42 = vshrl.u32 %v1666_v17, 16  ;;  %v1847_v43 = vshrl.u32 %v1691_v22, 16  ;;  %v1939_v29 = vcombine.high %v1909_v21, %v6176_v48  ;;  %v1917_v51 = vpack.i.b16 %v1904_v31, %v1900_v16 }
 0x20f   : > { %v2456_v46 = vsel %vm2451_vm4, %v1845_v40, 0  ;;  %v1920_v52 = vshrl.u32 %v1904_v31, 16  ;;  %v817_v56 = vpack.i.b16 %v816_v26, %v815_v25  ;;  %v980_v58 = vrot.slane %v966_v28, %v6179_v53 }
 0x210   : > { %v6366_v57 = vrot.slane %v1909_v21, %v6179_v53  ;;  %5490 = vmatpush3.bf16.xpose.msra.mxu0 %v2456_v46  ;;  %v1848_v59 = vpack.i.b16 %v1847_v43, %v1846_v42  ;;  %v1954_v36 = vcombine.high %v1917_v51, %v6176_v48  ;;  %v1131_v54 = vrot.slane %v1124_v49, %v6188_v3 }
 0x211   : > { %v6368_v63 = vpack.i.b16 %v1920_v52, %v1919_v39  ;;  %5507 = vmatprep.subr.bf16.mxu0 %v5913_v37  ;;  %v1667_v0 = vcombine.high %v1666_v17, %v5916_v47  ;;  %v981_v4 = vcombine.low %v6331_v13, %v973_v19  ;;  %v2005_v27 = vcombine.high %v1913_v41, %v6176_v48 }
 0x212   : > { %v2502_v6 = vsel %vm2451_vm4, %v1848_v59, 0  ;;  %v1692_v7 = vcombine.high %v1691_v22, %v5916_v47  ;;  %v982_v10 = vcombine.high %v6331_v13, %v973_v19  ;;  %v1953_v55 = vrot.slane %v1939_v29, %v6179_v53 }
 0x213   : > { %5496 = vmatpush3.bf16.xpose.msra.mxu1 %v2502_v6  ;;  %v1968_v11 = vrot.slane %v1954_v36, %v6179_v53  ;;  %v2020_v49 = vcombine.high %v6368_v63, %v6176_v48  ;;  %v1032_v12 = vcombine.high %v817_v56, %v6176_v48  ;;  %v1039_v15 = vrot.slane %v817_v56, %v6179_v53 }
 0x214   : > { %v6386_v16 = vrot.slane %v1913_v41, %v6179_v53  ;;  %v1853_v17 = vshrl.u32 %v1692_v7, 16  ;;  %5501 = vmatprep.subr.bf16.mxu1 %v5913_v37  ;;  %v1285_v22 = vpack.i.b16 %v1131_v54, %v6296_v50  ;;  %v1852_v25 = vshrl.u32 %v1667_v0, 16 }
 0x215   : > { %v1985_v21 = vcombine.low %v1953_v55, %v1968_v11  ;;  %v1986_v13 = vcombine.high %v1953_v55, %v1968_v11  ;;  %v6391_v26 = vrot.slane %v981_v4, %v6188_v3  ;;  %v997_v28 = vcombine.low %v6341_v20, %v980_v58 }
 0x216   : > { %v2019_v31 = vrot.slane %v2005_v27, %v6179_v53  ;;  %v2034_v39 = vrot.slane %v2020_v49, %v6179_v53  ;;  %v998_v40 = vcombine.high %v6341_v20, %v980_v58  ;;  %v1854_v42 = vpack.i.b16 %v1853_v17, %v1852_v25 }
 0x217   : > { %v6398_v19 = vrot.slane %v1985_v21, %v6188_v3  ;;  %v6401_v41 = vrot.slane %v1986_v13, %v6188_v3  ;;  %5492 = vmatmul.mubr.msk.bf16.vlgmr.msra.gmra.mxu0 %vm2451_vm4, %v1285_v22  ;;  %v6405_v43 = vrot.slane %v982_v10, %v6188_v3  ;;  %v1961_v29 = vrot.slane %v1917_v51, %v6179_v53 }
 0x218   : > { %v2051_v46 = vcombine.low %v2019_v31, %v2034_v39  ;;  %v2052_v52 = vcombine.high %v2019_v31, %v2034_v39  ;;  %5509 = vmatprep.mubr.msk.bf16.mxu0 %vm5914_vm3, %v5913_v37  ;;  %v6411_v20 = vrot.slane %v1032_v12, %v6179_v53  ;;  %v1287_v59 = vshrl.u32 %v1131_v54, 16 }
 0x219   : > { %v2253_v56 = vcombine.low %v6398_v19, %v6401_v41  ;;  %v5281_v58 = vcombine.high %v6398_v19, %v6401_v41  ;;  %v1047_v36 = vcombine.low %v6344_v23, %v1039_v15  ;;  %v1048_v4 = vcombine.high %v6344_v23, %v1039_v15 }
 0x21a   : > { %v6420_v51 = vrot.slane %v2051_v46, %v6188_v3  ;;  %v6423_v27 = vrot.slane %v2052_v52, %v6188_v3  ;;  %v6426_v6 = vrot.slane %v997_v28, %v6188_v3  ;;  %v6429_v10 = vrot.slane %v998_v40, %v6188_v3 }
 0x21b   : > { %v2594_v55 = vsel %vm2451_vm4, %v1854_v42, 0  ;;  %v1286_v11 = vshrl.u32 %v6296_v50, 16  ;;  %v1969_v49 = vcombine.low %v6366_v57, %v1961_v29  ;;  %v1970_v23 = vcombine.high %v6366_v57, %v1961_v29 }
 0x21c   : > { %v2278_v12 = vcombine.low %v6420_v51, %v6423_v27  ;;  %v5282_v15 = vcombine.high %v6420_v51, %v6423_v27  ;;  %5508 = vmatpush3.bf16.xpose.msra.mxu0 %v2594_v55  ;;  %v1851_v21 = vpack.i.b16 %v1692_v7, %v1667_v0  ;;  %v1107_v13 = vcombine.high %v6296_v50, %v5916_v47 }
 0x21d   : > { %v1288_v17 = vpack.i.b16 %v1287_v59, %v1286_v11  ;;  %v1132_v22 = vcombine.high %v1131_v54, %v5916_v47  ;;  %5519 = vmatprep.subr.bf16.mxu0 %v5913_v37  ;;  %v1055_v25 = vrot.slane %v1047_v36, %v6188_v3  ;;  %v1062_v57 = vrot.slane %v1048_v4, %v6188_v3 }
 0x21e   : > { %v1709_v28 = vcombine.low %v6226_v1, %v6229_v2  ;;  %v1734_v31 = vcombine.low %v6252_v35, %v6255_v30  ;;  %v2027_v0 = vrot.slane %v6368_v63, %v6179_v53  ;;  %v2548_v50 = vsel %vm2451_vm4, %v1851_v21, 0 }
 0x21f   : > { %5498 = vmatmul.mubr.msk.bf16.vlgmr.msra.gmra.mxu1 %vm2451_vm4, %v1288_v17  ;;  %v1292_v54 = vshrl.u32 %v1107_v13, 16  ;;  %v1293_v7 = vshrl.u32 %v1132_v22, 16  ;;  %v1183_v39 = vcombine.low %v6391_v26, %v6405_v43  ;;  %v5267_v35 = vcombine.high %v6391_v26, %v6405_v43 }
 0x220   : > { %5502 = vmatpush3.bf16.xpose.msra.mxu1 %v2548_v50  ;;  %5503 = vmatprep.mubr.msk.bf16.mxu1 %vm5914_vm3, %v5913_v37  ;;  %v1716_v1 = vrot.slane %v1709_v28, %v6188_v3  ;;  %v1741_v2 = vrot.slane %v1734_v31, %v6188_v3  ;;  %v1977_v30 = vrot.slane %v1969_v49, %v6188_v3 }
 0x221   : > { %v1984_v63 = vrot.slane %v1970_v23, %v6188_v3  ;;  %v1294_v40 = vpack.i.b16 %v1293_v7, %v1292_v54  ;;  %5513 = vmatprep.subr.bf16.mxu1 %v5913_v37  ;;  %v1063_v42 = vcombine.low %v6349_v24, %v6411_v20  ;;  %v1208_v29 = vcombine.low %v1055_v25, %v1062_v57 }
 0x222   : > { %v1858_v46 = vshrl.u32 %v1716_v1, 16  ;;  %v1859_v52 = vshrl.u32 %v1741_v2, 16  ;;  %v2035_v59 = vcombine.low %v6386_v16, %v2027_v0  ;;  %v2036_v36 = vcombine.high %v6386_v16, %v2027_v0 }
 0x223   : > { %5510 = vmatmul.mubr.msk.bf16.vlgmr.msra.gmra.mxu0 %vm2451_vm4, %v1294_v40  ;;  %v1857_v26 = vpack.i.b16 %v1741_v2, %v1716_v1  ;;  %v1742_v43 = vcombine.high %v1741_v2, %v5916_v47  ;;  %v5268_v4 = vcombine.high %v1055_v25, %v1062_v57  ;;  %v1181_v11 = vrot.slane %v1174_v5, %v6188_v3 }
 0x224   : > { %v1860_v55 = vpack.i.b16 %v1859_v52, %v1858_v46  ;;  %5521 = vmatprep.mubr.msk.bf16.mxu0 %vm5914_vm3, %v5913_v37  ;;  %v1717_v49 = vcombine.high %v1716_v1, %v5916_v47  ;;  %v1064_v16 = vcombine.high %v6349_v24, %v6411_v20  ;;  %v6480_v23 = vrot.slane %v1183_v39, %v6179_v53 }
 0x225   : > { %v2203_v17 = vcombine.low %v1977_v30, %v1984_v63  ;;  %v1291_v21 = vpack.i.b16 %v1132_v22, %v1107_v13  ;;  %v5279_v25 = vcombine.high %v1977_v30, %v1984_v63  ;;  %v1865_v28 = vshrl.u32 %v1742_v43, 16 }
 0x226   : > { %v2686_v57 = vsel %vm2451_vm4, %v1860_v55, 0  ;;  %v1784_v31 = vcombine.low %v6334_v14, %v6337_v18  ;;  %v1198_v44 = vrot.slane %v5267_v35, %v6179_v53  ;;  %v2043_v45 = vrot.slane %v2035_v59, %v6188_v3 }
 0x227   : > { %v2050_v5 = vrot.slane %v2036_v36, %v6188_v3  ;;  %5520 = vmatpush3.bf16.xpose.msra.mxu0 %v2686_v57  ;;  %5504 = vmatmul.mubr.msk.bf16.vlgmr.msra.gmra.mxu1 %vm2451_vm4, %v1291_v21  ;;  %v2640_v24 = vsel %vm2451_vm4, %v1857_v26, 0  ;;  %v1215_v20 = vrot.slane %v1208_v29, %v6179_v53  ;;  %v1223_v13 = vrot.slane %v5268_v4, %v6179_v53 }
 0x228   : > { %5514 = vmatpush3.bf16.xpose.msra.mxu1 %v2640_v24  ;;  %v1299_v22 = vshrl.u32 %v1181_v11, 16  ;;  %5531 = vmatprep.subr.bf16.mxu0 %v5913_v37  ;;  %v1864_v14 = vshrl.u32 %v1717_v49, 16  ;;  %v1233_v18 = vcombine.low %v6426_v6, %v6429_v10  ;;  %v5269_v0 = vcombine.high %v6426_v6, %v6429_v10 }
 0x229   : > { %v2210_v50 = vrot.slane %v2203_v17, %v6179_v53  ;;  %5515 = vmatprep.mubr.msk.bf16.mxu1 %vm5914_vm3, %v5913_v37  ;;  %5525 = vmatprep.subr.bf16.mxu1 %v5913_v37  ;;  %v2218_v54 = vrot.slane %v5279_v25, %v6179_v53  ;;  %v1298_v7 = vshrl.u32 %v6309_v61, 16  ;;  %v1791_v1 = vrot.slane %v1784_v31, %v6188_v3 }
 0x22a   : > { %v1866_v39 = vpack.i.b16 %v1865_v28, %v1864_v14  ;;  %v6505_v2 = vrot.slane %v1063_v42, %v6188_v3  ;;  %v2228_v35 = vcombine.low %v2043_v45, %v2050_v5  ;;  %v5280_v30 = vcombine.high %v2043_v45, %v2050_v5 }
 0x22b   : > { %v1863_v6 = vpack.i.b16 %v1742_v43, %v1717_v49  ;;  %v1224_v10 = vcombine.low %v1215_v20, %v1223_v13  ;;  %v1300_v63 = vpack.i.b16 %v1299_v22, %v1298_v7  ;;  %v1182_v40 = vcombine.high %v1181_v11, %v5916_v47 }
 0x22c   : > { %v1766_v29 = vrot.slane %v1759_v62, %v6188_v3  ;;  %v6513_v46 = vrot.slane %v1064_v16, %v6188_v3  ;;  %v1199_v52 = vcombine.low %v6480_v23, %v1198_v44  ;;  %v6517_v42 = vrot.slane %v1233_v18, %v6179_v53 }
 0x22d   : > { %v1297_v59 = vpack.i.b16 %v1181_v11, %v6309_v61  ;;  %v2219_v36 = vcombine.low %v2210_v50, %v2218_v54  ;;  %v2778_v26 = vsel %vm2451_vm4, %v1866_v39, 0  ;;  %v1157_v43 = vcombine.high %v6309_v61, %v5916_v47 }
 0x22e   : > { %5522 = vmatmul.mubr.msk.bf16.vlgmr.msra.gmra.mxu0 %vm2451_vm4, %v1300_v63  ;;  %v1871_v33 = vshrl.u32 %v1791_v1, 16  ;;  %v6525_v60 = vrot.slane %v5269_v0, %v6179_v53  ;;  %v2235_v62 = vrot.slane %v2228_v35, %v6179_v53  ;;  %v2243_v4 = vrot.slane %v5280_v30, %v6179_v53 }
 0x22f   : > { %5532 = vmatpush3.bf16.xpose.msra.mxu0 %v2778_v26  ;;  %5516 = vmatmul.mubr.msk.bf16.vlgmr.msra.gmra.mxu1 %vm2451_vm4, %v1297_v59  ;;  %v2732_v55 = vsel %vm2451_vm4, %v1863_v6, 0  ;;  %v6532_v11 = vrot.slane %v1224_v10, %v6188_v3  ;;  %v1305_v61 = vshrl.u32 %v1182_v40, 16  ;;  %v1870_v49 = vshrl.u32 %v1766_v29, 16 }
 0x230   : > { %5526 = vmatpush3.bf16.xpose.msra.mxu1 %v2732_v55  ;;  %5533 = vmatprep.mubr.msk.bf16.mxu0 %vm5914_vm3, %v5913_v37  ;;  %v6537_v16 = vcombine.high %v1791_v1, %v5916_v47  ;;  %v1258_v23 = vcombine.low %v6505_v2, %v6513_v46  ;;  %v2260_v17 = vrot.slane %v2253_v56, %v6179_v53  ;;  %v1304_v25 = vshrl.u32 %v1157_v43, 16 }
 0x231   : > { %v2268_v21 = vrot.slane %v5281_v58, %v6179_v53  ;;  %5543 = vmatprep.subr.bf16.mxu0 %v5913_v37  ;;  %5527 = vmatprep.mubr.msk.bf16.mxu1 %vm5914_vm3, %v5913_v37  ;;  %v1872_v57 = vpack.i.b16 %v1871_v33, %v1870_v49  ;;  %v1767_v28 = vcombine.high %v1766_v29, %v5916_v47  ;;  %v1311_v5 = vshrl.u32 %v6532_v11, 16 }
 0x232   : > { %5537 = vmatprep.subr.bf16.mxu1 %v5913_v37  ;;  %v6555_v31 = vrot.slane %v2219_v36, %v6188_v3  ;;  %v1206_v56 = vrot.slane %v1199_v52, %v6188_v3  ;;  %v5270_v19 = vcombine.high %v6505_v2, %v6513_v46  ;;  %v1869_v41 = vpack.i.b16 %v1791_v1, %v1766_v29 }
 0x233   : > { %v2244_v58 = vcombine.low %v2235_v62, %v2243_v4  ;;  %v1306_v44 = vpack.i.b16 %v1305_v61, %v1304_v25  ;;  %v1303_v45 = vpack.i.b16 %v1182_v40, %v1157_v43  ;;  %v1877_v24 = vshrl.u32 %v6537_v16, 16 }
 0x234   : > { %v1834_v20 = vcombine.low %v6354_v32, %v6357_v38  ;;  %v6569_v22 = vcombine.high %v6555_v31, %v5916_v47  ;;  %v2269_v14 = vcombine.low %v2260_v17, %v2268_v21  ;;  %v2870_v18 = vsel %vm2451_vm4, %v1872_v57, 0 }
 0x235   : > { %v6565_v13 = vrot.slane %v2244_v58, %v6188_v3  ;;  %v1876_v0 = vshrl.u32 %v1767_v28, 16  ;;  %v2285_v50 = vrot.slane %v2278_v12, %v6179_v53  ;;  %v2293_v32 = vrot.slane %v5282_v15, %v6179_v53 }
 0x236   : > { %5534 = vmatmul.mubr.msk.bf16.vlgmr.msra.gmra.mxu0 %vm2451_vm4, %v1306_v44  ;;  %v1265_v38 = vrot.slane %v1258_v23, %v6179_v53  ;;  %v2824_v54 = vsel %vm2451_vm4, %v1869_v41, 0  ;;  %v1809_v7 = vcombine.low %v6321_v8, %v6324_v9  ;;  %v1310_v51 = vshrl.u32 %v1206_v56, 16 }
 0x237   : > { %5544 = vmatpush3.bf16.xpose.msra.mxu0 %v2870_v18  ;;  %5528 = vmatmul.mubr.msk.bf16.vlgmr.msra.gmra.mxu1 %vm2451_vm4, %v1303_v45  ;;  %v6588_v39 = vcombine.high %v6565_v13, %v5916_v47  ;;  %v1878_v27 = vpack.i.b16 %v1877_v24, %v1876_v0  ;;  %v6593_v12 = vrot.slane %v2269_v14, %v6188_v3  ;;  %v2412_v1 = vshrl.u32 %v6569_v22, 16 }
 0x238   : > { %5538 = vmatpush3.bf16.xpose.msra.mxu1 %v2824_v54  ;;  %5545 = vmatprep.mubr.msk.bf16.mxu0 %vm5914_vm3, %v5913_v37  ;;  %v2294_v15 = vcombine.low %v2285_v50, %v2293_v32  ;;  %v1841_v8 = vrot.slane %v1834_v20, %v6188_v3  ;;  %v1273_v35 = vrot.slane %v5270_v19, %v6179_v53 }
 0x239   : > { %5555 = vmatprep.subr.bf16.mxu0 %v5913_v37  ;;  %5539 = vmatprep.mubr.msk.bf16.mxu1 %vm5914_vm3, %v5913_v37  ;;  %v2411_v9 = vpack.i.b16 %v6588_v39, %v6569_v22  ;;  %v2413_v2 = vshrl.u32 %v6588_v39, 16  ;;  %v1312_v30 = vpack.i.b16 %v1311_v5, %v1310_v51  ;;  %v6610_v10 = vcombine.high %v6593_v12, %v5916_v47 }
 0x23a   : > { %5549 = vmatprep.subr.bf16.mxu1 %v5913_v37  ;;  %v6606_v6 = vrot.slane %v2294_v15, %v6188_v3  ;;  %v1875_v63 = vpack.i.b16 %v6537_v16, %v1767_v28  ;;  %v1232_v40 = vcombine.high %v6532_v11, %v5916_v47  ;;  %v1816_v29 = vrot.slane %v1809_v7, %v6188_v3 }
 0x23b   : > { %v6616_v46 = vpack.i.b16 %v2413_v2, %v2412_v1  ;;  %v2418_v59 = vshrl.u32 %v6593_v12, 16  ;;  %v2962_v43 = vsel %vm2451_vm4, %v1878_v27, 0  ;;  %v1309_v33 = vpack.i.b16 %v6532_v11, %v1206_v56 }
 0x23c   : > { %v2417_v52 = vpack.i.b16 %v6606_v6, %v6593_v12  ;;  %v2419_v36 = vshrl.u32 %v6606_v6, 16  ;;  %v6624_v26 = vcombine.high %v6606_v6, %v5916_v47  ;;  %v1207_v62 = vcombine.high %v1206_v56, %v5916_v47 }
 0x23d   : > { %v1883_v4 = vshrl.u32 %v1841_v8, 16  ;;  %v2424_v49 = vshrl.u32 %v6610_v10, 16  ;;  %v2916_v23 = vsel %vm2451_vm4, %v1875_v63, 0  ;;  %v1274_v11 = vcombine.low %v1265_v38, %v1273_v35 }
 0x23e   : > { %5546 = vmatmul.mubr.msk.bf16.vlgmr.msra.gmra.mxu0 %vm2451_vm4, %v1312_v30  ;;  %v6630_v55 = vpack.i.b16 %v2419_v36, %v2418_v59  ;;  %v2423_v61 = vpack.i.b16 %v6624_v26, %v6610_v10  ;;  %v2425_v16 = vshrl.u32 %v6624_v26, 16  ;;  %v1317_v17 = vshrl.u32 %v1232_v40, 16 }
 0x23f   : > { %5556 = vmatpush3.bf16.xpose.msra.mxu0 %v2962_v43  ;;  %5540 = vmatmul.mubr.msk.bf16.vlgmr.msra.gmra.mxu1 %vm2451_vm4, %v1309_v33  ;;  %v1882_v21 = vshrl.u32 %v1816_v29, 16  ;;  %v1249_v57 = vcombine.low %v6517_v42, %v6525_v60  ;;  %v1316_v28 = vshrl.u32 %v1207_v62, 16  ;;  %v1842_v19 = vcombine.high %v1841_v8, %v5916_v47 }
 0x240   : > { %5550 = vmatpush3.bf16.xpose.msra.mxu1 %v2916_v23  ;;  %5557 = vmatprep.mubr.msk.bf16.mxu0 %vm5914_vm3, %v5913_v37  ;;  %v6640_v25 = vpack.i.b16 %v2425_v16, %v2424_v49  ;;  %v1881_v41 = vpack.i.b16 %v1841_v8, %v1816_v29  ;;  %v1281_v44 = vrot.slane %v1274_v11, %v6188_v3  ;;  %v2407_v15 = vshrl.u32 %v6565_v13, 16 }
 0x241   : > { %5567 = vmatprep.subr.bf16.mxu0 %v5913_v37  ;;  %5551 = vmatprep.mubr.msk.bf16.mxu1 %vm5914_vm3, %v5913_v37  ;;  %v1884_v56 = vpack.i.b16 %v1883_v4, %v1882_v21  ;;  %v1318_v58 = vpack.i.b16 %v1317_v17, %v1316_v28  ;;  %v1817_v45 = vcombine.high %v1816_v29, %v5916_v47  ;;  %v1889_v42 = vshrl.u32 %v1842_v19, 16 }
 0x242   : > { %5561 = vmatprep.subr.bf16.mxu1 %v5913_v37  ;;  %v1315_v5 = vpack.i.b16 %v1232_v40, %v1207_v62  ;;  %v1256_v24 = vrot.slane %v1249_v57, %v6188_v3  ;;  %v3008_v60 = vsel %vm2451_vm4, %v1881_v41, 0  ;;  %v1323_v14 = vshrl.u32 %v1281_v44, 16 }
 0x243   : > { %v3054_v20 = vsel %vm2451_vm4, %v1884_v56, 0  ;;  %v1888_v18 = vshrl.u32 %v1817_v45, 16  ;;  %v1887_v32 = vpack.i.b16 %v1842_v19, %v1817_v45  ;;  %v1282_v54 = vcombine.high %v1281_v44, %v5916_v47 }
 0x244   : > { %v1322_v0 = vshrl.u32 %v1256_v24, 16  ;;  %v1321_v7 = vpack.i.b16 %v1281_v44, %v1256_v24  ;;  %v1257_v27 = vcombine.high %v1256_v24, %v5916_v47  ;;  %v2406_v2 = vshrl.u32 %v6555_v31, 16 }
 0x245   : > { %v1890_v50 = vpack.i.b16 %v1889_v42, %v1888_v18  ;;  %v3100_v8 = vsel %vm2451_vm4, %v1887_v32, 0  ;;  %v1329_v1 = vshrl.u32 %v1282_v54, 16  ;;  %v2405_v63 = vpack.i.b16 %v6565_v13, %v6555_v31 }
 0x246   : > { %5558 = vmatmul.mubr.msk.bf16.vlgmr.msra.gmra.mxu0 %vm2451_vm4, %v1318_v58  ;;  %v1324_v38 = vpack.i.b16 %v1323_v14, %v1322_v0  ;;  %v1328_v35 = vshrl.u32 %v1257_v27, 16  ;;  %v2408_v30 = vpack.i.b16 %v2407_v15, %v2406_v2  ;;  %v1327_v29 = vpack.i.b16 %v1282_v54, %v1257_v27 }
 0x247   : > { %5568 = vmatpush3.bf16.xpose.msra.mxu0 %v3054_v20  ;;  %5552 = vmatmul.mubr.msk.bf16.vlgmr.msra.gmra.mxu1 %vm2451_vm4, %v1315_v5  ;;  %v3146_v51 = vsel %vm2451_vm4, %v1890_v50, 0  ;;  %v3353_v36 = vsel %vm3351_vm5, %v2405_v63, 0  ;;  %v3491_v39 = vsel %vm3351_vm5, %v6616_v46, 0 }
 0x248   : > { %5562 = vmatpush3.bf16.xpose.msra.mxu1 %v3008_v60  ;;  %5569 = vmatprep.mubr.msk.bf16.mxu0 %vm5914_vm3, %v5913_v37  ;;  %v1330_v40 = vpack.i.b16 %v1329_v1, %v1328_v35  ;;  %v3399_v59 = vsel %vm3351_vm5, %v2408_v30, 0 }
 0x249   : > { %5579 = vmatprep.subr.bf16.mxu0 %v5913_v37  ;;  %5563 = vmatprep.mubr.msk.bf16.mxu1 %vm5914_vm3, %v5913_v37 }
 0x24a   : > { %5573 = vmatprep.subr.bf16.mxu1 %v5913_v37 }
 0x24e   : > { %5570 = vmatmul.mubr.msk.bf16.vlgmr.msra.gmra.mxu0 %vm2451_vm4, %v1324_v38 }
 0x24f   : > { %5580 = vmatpush3.bf16.xpose.msra.mxu0 %v3146_v51  ;;  %5564 = vmatmul.mubr.msk.bf16.vlgmr.msra.gmra.mxu1 %vm2451_vm4, %v1321_v7 }
 0x250   : > { %5574 = vmatpush3.bf16.xpose.msra.mxu1 %v3100_v8  ;;  %5581 = vmatprep.mubr.msk.bf16.mxu0 %vm5914_vm3, %v5913_v37 }
 0x251   : > { %5591 = vmatprep.subr.bf16.mxu0 %v5913_v37  ;;  %5575 = vmatprep.mubr.msk.bf16.mxu1 %vm5914_vm3, %v5913_v37 }
 0x252   : > { %5585 = vmatprep.subr.bf16.mxu1 %v5913_v37 }
 0x256   : > { %5582 = vmatmul.mubr.msk.bf16.vlgmr.msra.gmra.mxu0 %vm2451_vm4, %v1330_v40 }
 0x257   : > { %5592 = vmatpush3.bf16.msra.mxu0 %v3399_v59  ;;  %5576 = vmatmul.mubr.msk.bf16.vlgmr.msra.gmra.mxu1 %vm2451_vm4, %v1327_v29 }
 0x258   : > { %5586 = vmatpush3.bf16.msra.mxu1 %v3353_v36  ;;  %5587 = vmatprep.mubr.msk.bf16.mxu1 %vm5914_vm3, %v5913_v37 }
 0x259   : > { %5597 = vmatprep.subr.bf16.mxu1 %v5913_v37  ;;  %5593 = vmatprep.mubr.msk.bf16.mxu0 %vm5914_vm3, %v5913_v37 }
 0x25a   : > { %5603 = vmatprep.subr.bf16.mxu0 %v5913_v37 }
 0x2d7   : > { %v6688_v31 = vpop.f32.mrf.mxu0 }
 0x2d8   : > { %v3188_v13 = vsel %vm2451_vm4, %v6688_v31, -inf }
 0x2d9   : > { %3189 = vmax.xlane.f32.xlu0 %v3188_v13  ;;  %v5493_v43 = vpop.f32.mrf.mxu0 }
 0x2db   : > { %v2495_v33 = vpop.f32.mrf.mxu0 }
 0x2dd   : > { %v5494_v62 = vpop.f32.mrf.mxu0 }
 0x2df   : > { %v6692_v4 = vpop.f32.mrf.mxu1 }
 0x2e0   : > { %v3191_v49 = vsel %vm2451_vm4, %v6692_v4, -inf }
 0x2e1   : > { %3192 = vmax.xlane.f32.xlu1 %v3191_v49  ;;  %v5499_v16 = vpop.f32.mrf.mxu1 }
 0x2e3   : > { %v2541_v23 = vpop.f32.mrf.mxu1  ;;  %v6696_v11 = vpop.f32.mrf.mxu0 }
 0x2e4   : > { %v3197_v17 = vsel %vm2451_vm4, %v6696_v11, -inf }
 0x2e5   : > { %v5500_v21 = vpop.f32.mrf.mxu1  ;;  %3198 = vmax.xlane.f32.xlu0 %v3197_v17  ;;  %v5511_v57 = vpop.f32.mrf.mxu0 }
 0x2e7   : > { %v6700_v28 = vpop.f32.mrf.mxu1  ;;  %v2633_v56 = vpop.f32.mrf.mxu0 }
 0x2e8   : > { %v3194_v19 = vsel %vm2451_vm4, %v6700_v28, -inf }
 0x2e9   : > { %3195 = vmax.xlane.f32.xlu1 %v3194_v19  ;;  %v5505_v41 = vpop.f32.mrf.mxu1  ;;  %v5512_v58 = vpop.f32.mrf.mxu0 }
 0x2eb   : > { %v2587_v44 = vpop.f32.mrf.mxu1 }
 0x2ed   : > { %v5506_v45 = vpop.f32.mrf.mxu1 }
 0x2ee   : > { %v6704_v5 = vpop.f32.mrf.mxu0 }
 0x2ef   : > { %v3203_v24 = vsel %vm2451_vm4, %v6704_v5, -inf  ;;  %v6708_v20 = vpop.f32.mrf.mxu1 }
 0x2f0   : > { %3204 = vmax.xlane.f32.xlu1 %v3203_v24  ;;  %v5523_v42 = vpop.f32.mrf.mxu0  ;;  %v3200_v60 = vsel %vm2451_vm4, %v6708_v20, -inf }
 0x2f1   : > { %3201 = vmax.xlane.f32.xlu0 %v3200_v60  ;;  %v5517_v14 = vpop.f32.mrf.mxu1 }
 0x2f2   : > { %v2725_v18 = vpop.f32.mrf.mxu0 }
 0x2f3   : > { %v2679_v0 = vpop.f32.mrf.mxu1 }
 0x2f4   : > { %v5524_v50 = vpop.f32.mrf.mxu0 }
 0x2f5   : > { %v5518_v32 = vpop.f32.mrf.mxu1 }
 0x2f6   : > { %v6712_v38 = vpop.f32.mrf.mxu0 }
 0x2f7   : > { %v3209_v54 = vsel %vm2451_vm4, %v6712_v38, -inf  ;;  %v6716_v7 = vpop.f32.mrf.mxu1 }
 0x2f8   : > { %3210 = vmax.xlane.f32.xlu1 %v3209_v54  ;;  %v5535_v51 = vpop.f32.mrf.mxu0  ;;  %v3206_v27 = vsel %vm2451_vm4, %v6716_v7, -inf }
 0x2f9   : > { %3207 = vmax.xlane.f32.xlu0 %v3206_v27  ;;  %v5529_v15 = vpop.f32.mrf.mxu1 }
 0x2fa   : > { %v2817_v8 = vpop.f32.mrf.mxu0 }
 0x2fb   : > { %v2771_v1 = vpop.f32.mrf.mxu1 }
 0x2fc   : > { %v5536_v2 = vpop.f32.mrf.mxu0 }
 0x2fd   : > { %v5530_v35 = vpop.f32.mrf.mxu1 }
 0x2fe   : > { %v6720_v30 = vpop.f32.mrf.mxu0 }
 0x2ff   : > { %v3215_v63 = vsel %vm2451_vm4, %v6720_v30, -inf  ;;  %v6724_v40 = vpop.f32.mrf.mxu1 }
 0x300   : > { %3216 = vmax.xlane.f32.xlu1 %v3215_v63  ;;  %v5547_v29 = vpop.f32.mrf.mxu0  ;;  %v3212_v59 = vsel %vm2451_vm4, %v6724_v40, -inf }
 0x301   : > { %3213 = vmax.xlane.f32.xlu0 %v3212_v59  ;;  %v5541_v36 = vpop.f32.mrf.mxu1 }
 0x302   : > { %v2909_v13 = vpop.f32.mrf.mxu0 }
 0x303   : > { %v2863_v43 = vpop.f32.mrf.mxu1 }
 0x304   : > { %v5548_v33 = vpop.f32.mrf.mxu0 }
 0x305   : > { %v5542_v62 = vpop.f32.mrf.mxu1 }
 0x306   : > { %v6728_v49 = vpop.f32.mrf.mxu0 }
 0x307   : > { %v6730_v16 = vpop.f32.mrf.mxu1  ;;  %v3221_v1 = vsel %vm2451_vm4, %v6728_v49, -inf }
 0x308   : > { %v5559_v23 = vpop.f32.mrf.mxu0  ;;  %v3218_v8 = vsel %vm2451_vm4, %v6730_v16, -inf }
 0x309   : > { %v5553_v17 = vpop.f32.mrf.mxu1 }
 0x30a   : > { %v3001_v21 = vpop.f32.mrf.mxu0 }
 0x30b   : > { %v2955_v57 = vpop.f32.mrf.mxu1 }
 0x30c   : > { %v5560_v56 = vpop.f32.mrf.mxu0 }
 0x30d   : > { %v5554_v19 = vpop.f32.mrf.mxu1 }
 0x30e   : > { %v6732_v41 = vpop.f32.mrf.mxu0 }
 0x30f   : > { %v6734_v58 = vpop.f32.mrf.mxu1  ;;  %v3227_v63 = vsel %vm2451_vm4, %v6732_v41, -inf }
 0x310   : > { %v5571_v44 = vpop.f32.mrf.mxu0  ;;  %v3224_v2 = vsel %vm2451_vm4, %v6734_v58, -inf }
 0x311   : > { %1901 = vrot.lane.b32.xlu1 %v6154_v34, %s5910_s25  ;;  %v5565_v45 = vpop.f32.mrf.mxu1 }
 0x312   : > { %v3093_v24 = vpop.f32.mrf.mxu0 }
 0x313   : > { %v3047_v42 = vpop.f32.mrf.mxu1 }
 0x314   : > { %v5572_v60 = vpop.f32.mrf.mxu0 }
 0x315   : > { %1905 = vrot.lane.b32.xlu1 %v6154_v34, %s5912_s21  ;;  %v5566_v14 = vpop.f32.mrf.mxu1 }
 0x316   : > { %v6740_v18 = vpop.f32.mrf.mxu0 }
 0x317   : > { %1897 = vrot.lane.b32.xlu0 %v6154_v34, %s5911_s26  ;;  %v6744_v0 = vpop.f32.mrf.mxu1  ;;  %v3233_v29 = vsel %vm2451_vm4, %v6740_v18, -inf }
 0x318   : > { %v5583_v50 = vpop.f32.mrf.mxu0  ;;  %v3230_v35 = vsel %vm2451_vm4, %v6744_v0, -inf }
 0x319   : > { %v5577_v32 = vpop.f32.mrf.mxu1 }
 0x31a   : > { %v3185_v54 = vpop.f32.mrf.mxu0 }
 0x31b   : > { %v3139_v51 = vpop.f32.mrf.mxu1 }
 0x31c   : > { %v5584_v27 = vpop.f32.mrf.mxu0 }
 0x31d   : > { %v5578_v15 = vpop.f32.mrf.mxu1 }
 0x336   : > { %3219 = vmax.xlane.f32.xlu0 %v3218_v8 }
 0x339   : > { %3222 = vmax.xlane.f32.xlu1 %v3221_v1 }
 0x33a   : > { %3225 = vmax.xlane.f32.xlu0 %v3224_v2 }
 0x33d   : > { %3231 = vmax.xlane.f32.xlu1 %v3230_v35 }
 0x33e   : > { %3228 = vmax.xlane.f32.xlu0 %v3227_v63 }
 0x342   : > { %3234 = vmax.xlane.f32.xlu0 %v3233_v29 }
 0x362   : > { %v3190_v59 = vpop.xlane.xlu0 %3189 }
 0x363   : > { %v3236_v36 = vsub.f32 %v6688_v31, %v3190_v59 }
 0x365   : > { %v3252_v13 = vmul.f32 1.442695, %v3236_v36 }
 0x367   : > { %5782 = vpow2.f32 %v3252_v13 }
 0x36a   : > { %v3193_v43 = vpop.xlane.xlu1 %3192 }
 0x36b   : > { %v3237_v33 = vsub.f32 %v6692_v4, %v3193_v43  ;;  %v3445_v4 = vsel %vm3351_vm5, %v2411_v9, 0 }
 0x36d   : > { %v3254_v62 = vmul.f32 1.442695, %v3237_v33 }
 0x36e   : > { %v3199_v23 = vpop.xlane.xlu0 %3198 }
 0x36f   : > { %5784 = vpow2.f32 %v3254_v62  ;;  %v3239_v17 = vsub.f32 %v6696_v11, %v3199_v23 }
 0x371   : > { %v3258_v21 = vmul.f32 1.442695, %v3239_v17 }
 0x372   : > { %v3196_v57 = vpop.xlane.xlu1 %3195 }
 0x373   : > { %5786 = vpow2.f32 %v3258_v21  ;;  %v3238_v56 = vsub.f32 %v6700_v28, %v3196_v57  ;;  %v3675_v21 = vsel %vm3351_vm5, %v6640_v25, 0 }
 0x374   : > { %v5783_v19 = vpop.eup %5782 }
 0x375   : > { %v3256_v44 = vmul.f32 1.442695, %v3238_v56  ;;  %v3284_v45 = vsel %vm2451_vm4, %v5783_v19, 0.0  ;;  %v3332_v31 = vpack.c.bf16 %v5783_v19, %v5783_v19  ;;  %v1927_v56 = vshrl.u32 %v6154_v34, 16 }
 0x376   : > { %3285 = vadd.xlane.f32.xlu1 %v3284_v45 }
 0x377   : > { %5788 = vpow2.f32 %v3256_v44  ;;  %5588 = vmatmul.mubr.msk.bf16.vlgmr.msra.gmra.mxu1 %vm2451_vm4, %v3332_v31 }
 0x378   : > { %5598 = vmatpush3.bf16.msra.mxu1 %v3445_v4  ;;  %5599 = vmatprep.mubr.msk.bf16.mxu1 %vm5914_vm3, %v5913_v37 }
 0x379   : > { %v3205_v11 = vpop.xlane.xlu1 %3204  ;;  %5609 = vmatprep.subr.bf16.mxu1 %v5913_v37 }
 0x37a   : > { %v3241_v28 = vsub.f32 %v6704_v5, %v3205_v11  ;;  %v3202_v24 = vpop.xlane.xlu0 %3201 }
 0x37b   : > { %v3240_v42 = vsub.f32 %v6708_v20, %v3202_v24 }
 0x37c   : > { %v5785_v60 = vpop.eup %5784  ;;  %v3262_v14 = vmul.f32 1.442695, %v3241_v28 }
 0x37d   : > { %v3260_v50 = vmul.f32 1.442695, %v3240_v42  ;;  %v3287_v32 = vsel %vm2451_vm4, %v5785_v60, 0.0  ;;  %v3333_v22 = vpack.c.bf16 %v5785_v60, %v5785_v60 }
 0x37e   : > { %5790 = vpow2.f32 %v3262_v14  ;;  %3288 = vadd.xlane.f32.xlu0 %v3287_v32 }
 0x37f   : > { %5792 = vpow2.f32 %v3260_v50  ;;  %5594 = vmatmul.mubr.msk.bf16.vlgmr.msra.gmra.mxu0 %vm2451_vm4, %v3333_v22 }
 0x380   : > { %v5787_v9 = vpop.eup %5786  ;;  %5604 = vmatpush3.bf16.msra.mxu0 %v3491_v39  ;;  %5605 = vmatprep.mubr.msk.bf16.mxu0 %vm5914_vm3, %v5913_v37 }
 0x381   : > { %v3211_v5 = vpop.xlane.xlu1 %3210  ;;  %v3293_v20 = vsel %vm2451_vm4, %v5787_v9, 0.0  ;;  %5615 = vmatprep.subr.bf16.mxu0 %v5913_v37  ;;  %v3335_v35 = vpack.c.bf16 %v5787_v9, %v5787_v9 }
 0x382   : > { %v3243_v54 = vsub.f32 %v6712_v38, %v3211_v5  ;;  %v3208_v51 = vpop.xlane.xlu0 %3207  ;;  %3294 = vadd.xlane.f32.xlu0 %v3293_v20  ;;  %v3537_v38 = vsel %vm3351_vm5, %v2417_v52, 0 }
 0x383   : > { %v3242_v27 = vsub.f32 %v6716_v7, %v3208_v51  ;;  %v3583_v7 = vsel %vm3351_vm5, %v6630_v55, 0 }
 0x384   : > { %v5789_v15 = vpop.eup %5788  ;;  %v3266_v8 = vmul.f32 1.442695, %v3243_v54 }
 0x385   : > { %v3264_v1 = vmul.f32 1.442695, %v3242_v27  ;;  %v3290_v46 = vsel %vm2451_vm4, %v5789_v15, 0.0  ;;  %v3334_v2 = vpack.c.bf16 %v5789_v15, %v5789_v15 }
 0x386   : > { %5794 = vpow2.f32 %v3266_v8  ;;  %3291 = vadd.xlane.f32.xlu1 %v3290_v46 }
 0x387   : > { %5796 = vpow2.f32 %v3264_v1  ;;  %5600 = vmatmul.mubr.msk.bf16.vlgmr.msra.gmra.mxu1 %vm2451_vm4, %v3334_v2  ;;  %5606 = vmatmul.mubr.msk.bf16.vlgmr.msra.gmra.mxu0 %vm2451_vm4, %v3335_v35 }
 0x388   : > { %5610 = vmatpush3.bf16.msra.mxu1 %v3537_v38  ;;  %5616 = vmatpush3.bf16.msra.mxu0 %v3583_v7 }
 0x389   : > { %v3217_v63 = vpop.xlane.xlu1 %3216  ;;  %5611 = vmatprep.mubr.msk.bf16.mxu1 %vm5914_vm3, %v5913_v37  ;;  %5617 = vmatprep.mubr.msk.bf16.mxu0 %vm5914_vm3, %v5913_v37 }
 0x38a   : > { %v3245_v29 = vsub.f32 %v6720_v30, %v3217_v63  ;;  %v3214_v59 = vpop.xlane.xlu0 %3213  ;;  %5621 = vmatprep.subr.bf16.mxu1 %v5913_v37  ;;  %5627 = vmatprep.subr.bf16.mxu0 %v5913_v37 }
 0x38b   : > { %v5791_v12 = vpop.eup %5790  ;;  %v3244_v6 = vsub.f32 %v6724_v40, %v3214_v59  ;;  %v3629_v40 = vsel %vm3351_vm5, %v2423_v61, 0 }
 0x38c   : > { %v5793_v52 = vpop.eup %5792  ;;  %v3270_v55 = vmul.f32 1.442695, %v3245_v29  ;;  %v3299_v36 = vsel %vm2451_vm4, %v5791_v12, 0.0  ;;  %v3337_v23 = vpack.c.bf16 %v5791_v12, %v5791_v12 }
 0x38d   : > { %v3268_v13 = vmul.f32 1.442695, %v3244_v6  ;;  %v1902_v43 = vpop.permute.xlu1 %1901  ;;  %3300 = vadd.xlane.f32.xlu0 %v3299_v36  ;;  %v3296_v33 = vsel %vm2451_vm4, %v5793_v52, 0.0  ;;  %v3336_v62 = vpack.c.bf16 %v5793_v52, %v5793_v52 }
 0x38e   : > { %5798 = vpow2.f32 %v3270_v55  ;;  %v1898_v30 = vpop.permute.xlu0 %1897  ;;  %3297 = vadd.xlane.f32.xlu1 %v3296_v33  ;;  %v1935_v10 = vshrl.u32 %v1902_v43, 16 }
 0x38f   : > { %5800 = vpow2.f32 %v3268_v13  ;;  %v1928_v17 = vshrl.u32 %v1898_v30, 16  ;;  %5612 = vmatmul.mubr.msk.bf16.vlgmr.msra.gmra.mxu1 %vm2451_vm4, %v3336_v62  ;;  %5618 = vmatmul.mubr.msk.bf16.vlgmr.msra.gmra.mxu0 %vm2451_vm4, %v3337_v23  ;;  %v6811_v57 = vpack.i.b16 %v1898_v30, %v6154_v34 }
 0x390   : > { %5622 = vmatpush3.bf16.msra.mxu1 %v3629_v40  ;;  %5628 = vmatpush3.bf16.msra.mxu0 %v3675_v21 }
 0x391   : > { %v1906_v19 = vpop.permute.xlu1 %1905  ;;  %5623 = vmatprep.mubr.msk.bf16.mxu1 %vm5914_vm3, %v5913_v37  ;;  %5629 = vmatprep.mubr.msk.bf16.mxu0 %vm5914_vm3, %v5913_v37  ;;  %v6822_v44 = vpack.i.b16 %v1928_v17, %v1927_v56  ;;  %v2078_v34 = vrot.slane %v6811_v57, %v6179_v53 }
 0x392   : > { %v6818_v26 = vpack.i.b16 %v1906_v19, %v1902_v43  ;;  %v1936_v61 = vshrl.u32 %v1906_v19, 16  ;;  %5633 = vmatprep.subr.bf16.mxu1 %v5913_v37  ;;  %5639 = vmatprep.subr.bf16.mxu0 %v5913_v37 }
 0x393   : > { %v5795_v25 = vpop.eup %5794  ;;  %v2144_v50 = vrot.slane %v6822_v44, %v6179_v53 }
 0x394   : > { %v5797_v45 = vpop.eup %5796  ;;  %v6826_v31 = vpack.i.b16 %v1936_v61, %v1935_v10  ;;  %v2093_v4 = vrot.slane %v6818_v26, %v6179_v53  ;;  %v3305_v11 = vsel %vm2451_vm4, %v5795_v25, 0.0  ;;  %v3339_v42 = vpack.c.bf16 %v5795_v25, %v5795_v25 }
 0x395   : > { %3306 = vadd.xlane.f32.xlu0 %v3305_v11  ;;  %v3302_v28 = vsel %vm2451_vm4, %v5797_v45, 0.0  ;;  %v3338_v24 = vpack.c.bf16 %v5797_v45, %v5797_v45  ;;  %v2071_v11 = vcombine.high %v6811_v57, %v6176_v48 }
 0x396   : > { %v2101_v60 = vcombine.low %v2078_v34, %v2093_v4  ;;  %v2102_v14 = vcombine.high %v2078_v34, %v2093_v4  ;;  %3303 = vadd.xlane.f32.xlu1 %v3302_v28  ;;  %v2159_v32 = vrot.slane %v6826_v31, %v6179_v53  ;;  %v2152_v45 = vcombine.high %v6826_v31, %v6176_v48 }
 0x397   : > { %5624 = vmatmul.mubr.msk.bf16.vlgmr.msra.gmra.mxu1 %vm2451_vm4, %v3338_v24  ;;  %5630 = vmatmul.mubr.msk.bf16.vlgmr.msra.gmra.mxu0 %vm2451_vm4, %v3339_v42  ;;  %v2137_v34 = vcombine.high %v6822_v44, %v6176_v48  ;;  %v2086_v4 = vcombine.high %v6818_v26, %v6176_v48 }
 0x398   : > { %v2109_v22 = vrot.slane %v2101_v60, %v6188_v3  ;;  %v2116_v39 = vrot.slane %v2102_v14, %v6188_v3  ;;  %5635 = vmatprep.mubr.msk.bf16.mxu1 %vm5914_vm3, %v5913_v37  ;;  %v2167_v9 = vcombine.low %v2144_v50, %v2159_v32  ;;  %v2168_v5 = vcombine.high %v2144_v50, %v2159_v32 }
 0x399   : > { %5641 = vmatprep.mubr.msk.bf16.mxu0 %vm5914_vm3, %v5913_v37  ;;  %v2166_v28 = vrot.slane %v2152_v45, %v6179_v53  ;;  %v2151_v24 = vrot.slane %v2137_v34, %v6179_v53  ;;  %v2100_v42 = vrot.slane %v2086_v4, %v6179_v53  ;;  %v2085_v60 = vrot.slane %v2071_v11, %v6179_v53 }
 0x39a   : > { %v2303_v20 = vcombine.low %v2109_v22, %v2116_v39  ;;  %v5283_v54 = vcombine.high %v2109_v22, %v2116_v39  ;;  %v2175_v27 = vrot.slane %v2167_v9, %v6188_v3  ;;  %v2182_v15 = vrot.slane %v2168_v5, %v6188_v3 }
 0x39b   : > { %v5799_v51 = vpop.eup %5798  ;;  %v2183_v31 = vcombine.low %v2151_v24, %v2166_v28  ;;  %v2184_v14 = vcombine.high %v2151_v24, %v2166_v28  ;;  %v2117_v50 = vcombine.low %v2085_v60, %v2100_v42  ;;  %v2118_v32 = vcombine.high %v2085_v60, %v2100_v42 }
 0x39c   : > { %v5801_v8 = vpop.eup %5800  ;;  %v2310_v1 = vrot.slane %v2303_v20, %v6179_v53  ;;  %v2318_v46 = vrot.slane %v5283_v54, %v6179_v53  ;;  %v2328_v2 = vcombine.low %v2175_v27, %v2182_v15  ;;  %v5284_v35 = vcombine.high %v2175_v27, %v2182_v15 }
 0x39d   : > { %v3311_v38 = vsel %vm2451_vm4, %v5799_v51, 0.0  ;;  %v3308_v7 = vsel %vm2451_vm4, %v5801_v8, 0.0  ;;  %v3340_v56 = vpack.c.bf16 %v5801_v8, %v5801_v8  ;;  %v3341_v61 = vpack.c.bf16 %v5799_v51, %v5799_v51 }
 0x39e   : > { %v2335_v63 = vrot.slane %v2328_v2, %v6179_v53  ;;  %v2343_v29 = vrot.slane %v5284_v35, %v6179_v53  ;;  %3312 = vadd.xlane.f32.xlu0 %v3311_v38  ;;  %3309 = vadd.xlane.f32.xlu1 %v3308_v7  ;;  %v2319_v59 = vcombine.low %v2310_v1, %v2318_v46 }
 0x39f   : > { %v2191_v44 = vrot.slane %v2183_v31, %v6188_v3  ;;  %v2198_v22 = vrot.slane %v2184_v14, %v6188_v3  ;;  %v2125_v26 = vrot.slane %v2117_v50, %v6188_v3  ;;  %v2132_v48 = vrot.slane %v2118_v32, %v6188_v3 }
 0x3a0   : > { %v2344_v12 = vcombine.low %v2335_v63, %v2343_v29  ;;  %v2326_v6 = vrot.slane %v2319_v59, %v6188_v3 }
 0x3a1   : > { %v2378_v57 = vcombine.low %v2191_v44, %v2198_v22  ;;  %v5286_v39 = vcombine.high %v2191_v44, %v2198_v22  ;;  %v2353_v20 = vcombine.low %v2125_v26, %v2132_v48  ;;  %v5285_v54 = vcombine.high %v2125_v26, %v2132_v48 }
 0x3a2   : > { %v2351_v52 = vrot.slane %v2344_v12, %v6188_v3  ;;  %v2327_v55 = vcombine.high %v2326_v6, %v5916_v47  ;;  %v2430_v13 = vshrl.u32 %v2326_v6, 16 }
 0x3a3   : > { %v2385_v1 = vrot.slane %v2378_v57, %v6179_v53  ;;  %v2393_v46 = vrot.slane %v5286_v39, %v6179_v53  ;;  %v2360_v35 = vrot.slane %v2353_v20, %v6179_v53  ;;  %v2368_v38 = vrot.slane %v5285_v54, %v6179_v53 }
 0x3a4   : > { %v2429_v36 = vpack.i.b16 %v2351_v52, %v2326_v6  ;;  %v2431_v43 = vshrl.u32 %v2351_v52, 16  ;;  %v2352_v33 = vcombine.high %v2351_v52, %v5916_v47  ;;  %v2436_v62 = vshrl.u32 %v2327_v55, 16 }
 0x3a5   : > { %v2369_v52 = vcombine.low %v2360_v35, %v2368_v38 }
 0x3a6   : > { %v3721_v23 = vsel %vm3351_vm5, %v2429_v36, 0  ;;  %v2432_v30 = vpack.i.b16 %v2431_v43, %v2430_v13  ;;  %v2435_v17 = vpack.i.b16 %v2352_v33, %v2327_v55  ;;  %v2437_v40 = vshrl.u32 %v2352_v33, 16 }
 0x3a7   : > { %5634 = vmatpush3.bf16.msra.mxu1 %v3721_v23  ;;  %v2376_v43 = vrot.slane %v2369_v52, %v6188_v3 }
 0x3a8   : > { %v3767_v21 = vsel %vm3351_vm5, %v2432_v30, 0  ;;  %5645 = vmatprep.subr.bf16.mxu1 %v5913_v37  ;;  %v2438_v19 = vpack.i.b16 %v2437_v40, %v2436_v62  ;;  %v3813_v10 = vsel %vm3351_vm5, %v2435_v17, 0 }
 0x3a9   : > { %5640 = vmatpush3.bf16.msra.mxu0 %v3767_v21  ;;  %v2442_v30 = vshrl.u32 %v2376_v43, 16 }
 0x3aa   : > { %5636 = vmatmul.mubr.msk.bf16.vlgmr.msra.gmra.mxu1 %vm2451_vm4, %v3340_v56  ;;  %5651 = vmatprep.subr.bf16.mxu0 %v5913_v37  ;;  %v3859_v25 = vsel %vm3351_vm5, %v2438_v19, 0 }
 0x3ab   : > { %5646 = vmatpush3.bf16.msra.mxu1 %v3813_v10  ;;  %5647 = vmatprep.mubr.msk.bf16.mxu1 %vm5914_vm3, %v5913_v37 }
 0x3ac   : > { %5642 = vmatmul.mubr.msk.bf16.vlgmr.msra.gmra.mxu0 %vm2451_vm4, %v3341_v61  ;;  %5657 = vmatprep.subr.bf16.mxu1 %v5913_v37 }
 0x3ad   : > { %5652 = vmatpush3.bf16.msra.mxu0 %v3859_v25  ;;  %5653 = vmatprep.mubr.msk.bf16.mxu0 %vm5914_vm3, %v5913_v37  ;;  %v2377_v25 = vcombine.high %v2376_v43, %v5916_v47 }
 0x3ae   : > { %5663 = vmatprep.subr.bf16.mxu0 %v5913_v37 }
 0x3af   : > { %v2448_v42 = vshrl.u32 %v2377_v25, 16 }
 0x3bf   : > { %v3220_v9 = vpop.xlane.xlu0 %3219 }
 0x3c0   : > { %v3246_v5 = vsub.f32 %v6730_v16, %v3220_v9 }
 0x3c2   : > { %v3272_v51 = vmul.f32 1.442695, %v3246_v5  ;;  %v3223_v27 = vpop.xlane.xlu1 %3222 }
 0x3c3   : > { %v3247_v15 = vsub.f32 %v6728_v49, %v3223_v27  ;;  %v3226_v8 = vpop.xlane.xlu0 %3225  ;;  %v2394_v49 = vcombine.low %v2385_v1, %v2393_v46 }
 0x3c4   : > { %5802 = vpow2.f32 %v3272_v51  ;;  %v3248_v2 = vsub.f32 %v6734_v58, %v3226_v8 }
 0x3c5   : > { %v3274_v7 = vmul.f32 1.442695, %v3247_v15  ;;  %v2401_v36 = vrot.slane %v2394_v49, %v6188_v3 }
 0x3c6   : > { %v3276_v16 = vmul.f32 1.442695, %v3248_v2  ;;  %v3232_v63 = vpop.xlane.xlu1 %3231 }
 0x3c7   : > { %5804 = vpow2.f32 %v3274_v7  ;;  %v3250_v29 = vsub.f32 %v6744_v0, %v3232_v63  ;;  %v3229_v59 = vpop.xlane.xlu0 %3228  ;;  %v2443_v62 = vshrl.u32 %v2401_v36, 16  ;;  %v2441_v0 = vpack.i.b16 %v2401_v36, %v2376_v43 }
 0x3c8   : > { %5806 = vpow2.f32 %v3276_v16  ;;  %v3249_v12 = vsub.f32 %v6732_v41, %v3229_v59  ;;  %v2402_v21 = vcombine.high %v2401_v36, %v5916_v47 }
 0x3c9   : > { %v3280_v6 = vmul.f32 1.442695, %v3250_v29  ;;  %v2444_v40 = vpack.i.b16 %v2443_v62, %v2442_v30 }
 0x3ca   : > { %v3278_v55 = vmul.f32 1.442695, %v3249_v12  ;;  %v2449_v4 = vshrl.u32 %v2402_v21, 16  ;;  %v2447_v28 = vpack.i.b16 %v2402_v21, %v2377_v25 }
 0x3cb   : > { %5808 = vpow2.f32 %v3280_v6  ;;  %v3235_v58 = vpop.xlane.xlu0 %3234  ;;  %v3951_v34 = vsel %vm3351_vm5, %v2444_v40, 0 }
 0x3cc   : > { %5810 = vpow2.f32 %v3278_v55  ;;  %v3251_v13 = vsub.f32 %v6740_v18, %v3235_v58  ;;  %v3905_v18 = vsel %vm3351_vm5, %v2441_v0, 0  ;;  %v2450_v50 = vpack.i.b16 %v2449_v4, %v2448_v42 }
 0x3cd   : > { %v3997_v32 = vsel %vm3351_vm5, %v2447_v28, 0 }
 0x3ce   : > { %v3282_v33 = vmul.f32 1.442695, %v3251_v13  ;;  %v4043_v48 = vsel %vm3351_vm5, %v2450_v50, 0 }
 0x3d0   : > { %5812 = vpow2.f32 %v3282_v33 }
 0x3d1   : > { %v5803_v23 = vpop.eup %5802 }
 0x3d2   : > { %v3314_v41 = vsel %vm2451_vm4, %v5803_v23, 0.0  ;;  %v3342_v17 = vpack.c.bf16 %v5803_v23, %v5803_v23 }
 0x3d3   : > { %3315 = vadd.xlane.f32.xlu1 %v3314_v41 }
 0x3d4   : > { %v5805_v56 = vpop.eup %5804  ;;  %5648 = vmatmul.mubr.msk.bf16.vlgmr.msra.gmra.mxu1 %vm2451_vm4, %v3342_v17 }
 0x3d5   : > { %v5807_v19 = vpop.eup %5806  ;;  %5658 = vmatpush3.bf16.msra.mxu1 %v3905_v18  ;;  %v3317_v10 = vsel %vm2451_vm4, %v5805_v56, 0.0  ;;  %v3343_v61 = vpack.c.bf16 %v5805_v56, %v5805_v56  ;;  %5659 = vmatprep.mubr.msk.bf16.mxu1 %vm5914_vm3, %v5913_v37 }
 0x3d6   : > { %3318 = vadd.xlane.f32.xlu0 %v3317_v10  ;;  %v3320_v45 = vsel %vm2451_vm4, %v5807_v19, 0.0  ;;  %5669 = vmatprep.subr.bf16.mxu1 %v5913_v37  ;;  %v3344_v14 = vpack.c.bf16 %v5807_v19, %v5807_v19 }
 0x3d7   : > { %5654 = vmatmul.mubr.msk.bf16.vlgmr.msra.gmra.mxu0 %vm2451_vm4, %v3343_v61  ;;  %3321 = vadd.xlane.f32.xlu1 %v3320_v45 }
 0x3d8   : > { %v5809_v11 = vpop.eup %5808  ;;  %5664 = vmatpush3.bf16.msra.mxu0 %v3951_v34  ;;  %5665 = vmatprep.mubr.msk.bf16.mxu0 %vm5914_vm3, %v5913_v37 }
 0x3d9   : > { %v5811_v24 = vpop.eup %5810  ;;  %5675 = vmatprep.subr.bf16.mxu0 %v5913_v37  ;;  %v3326_v31 = vsel %vm2451_vm4, %v5809_v11, 0.0  ;;  %v3346_v57 = vpack.c.bf16 %v5809_v11, %v5809_v11 }
 0x3da   : > { %v3323_v60 = vsel %vm2451_vm4, %v5811_v24, 0.0  ;;  %v3345_v22 = vpack.c.bf16 %v5811_v24, %v5811_v24 }
 0x3db   : > { %3324 = vadd.xlane.f32.xlu0 %v3323_v60  ;;  %3327 = vadd.xlane.f32.xlu1 %v3326_v31 }
 0x3dc   : > { %5660 = vmatmul.mubr.msk.bf16.vlgmr.msra.gmra.mxu1 %vm2451_vm4, %v3344_v14 }
 0x3dd   : > { %v5813_v44 = vpop.eup %5812  ;;  %5670 = vmatpush3.bf16.msra.mxu1 %v3997_v32  ;;  %5671 = vmatprep.mubr.msk.bf16.mxu1 %vm5914_vm3, %v5913_v37 }
 0x3de   : > { %v3329_v26 = vsel %vm2451_vm4, %v5813_v44, 0.0  ;;  %v3347_v39 = vpack.c.bf16 %v5813_v44, %v5813_v44 }
 0x3df   : > { %5666 = vmatmul.mubr.msk.bf16.vlgmr.msra.gmra.mxu0 %vm2451_vm4, %v3345_v22  ;;  %3330 = vadd.xlane.f32.xlu0 %v3329_v26 }
 0x3e0   : > { %5676 = vmatpush3.bf16.msra.mxu0 %v4043_v48  ;;  %5677 = vmatprep.mubr.msk.bf16.mxu0 %vm5914_vm3, %v5913_v37 }
 0x3e4   : > { %5672 = vmatmul.mubr.msk.bf16.vlgmr.msra.gmra.mxu1 %vm2451_vm4, %v3346_v57 }
 0x3e7   : > { %5678 = vmatmul.mubr.msk.bf16.vlgmr.msra.gmra.mxu0 %vm2451_vm4, %v3347_v39 }
 0x3ff   : > { %v3286_v9 = vpop.xlane.xlu1 %3285 }
 0x400   : > { %5814 = vrcp.f32 %v3286_v9 }
 0x407   : > { %v3289_v5 = vpop.xlane.xlu0 %3288 }
 0x408   : > { %5816 = vrcp.f32 %v3289_v5 }
 0x40b   : > { %v3295_v20 = vpop.xlane.xlu0 %3294 }
 0x40c   : > { %5818 = vrcp.f32 %v3295_v20 }
 0x40d   : > { %v5815_v35 = vpop.eup %5814 }
 0x40f   : > { %v3292_v54 = vpop.xlane.xlu1 %3291 }
 0x410   : > { %5820 = vrcp.f32 %v3292_v54 }
 0x415   : > { %v5817_v38 = vpop.eup %5816 }
 0x416   : > { %v3301_v1 = vpop.xlane.xlu0 %3300 }
 0x417   : > { %v3298_v46 = vpop.xlane.xlu1 %3297  ;;  %5822 = vrcp.f32 %v3301_v1 }
 0x418   : > { %5824 = vrcp.f32 %v3298_v46 }
 0x419   : > { %v5819_v59 = vpop.eup %5818 }
 0x41d   : > { %v5821_v12 = vpop.eup %5820 }
 0x41e   : > { %v3307_v55 = vpop.xlane.xlu0 %3306 }
 0x41f   : > { %v3304_v49 = vpop.xlane.xlu1 %3303 }
 0x420   : > { %5826 = vrcp.f32 %v3304_v49 }
 0x421   : > { %5828 = vrcp.f32 %v3307_v55 }
 0x424   : > { %v5823_v34 = vpop.eup %5822 }
 0x425   : > { %v5825_v28 = vpop.eup %5824 }
 0x437   : > { %v3389_v51 = vpop.f32.mrf.mxu1 }
 0x438   : > { %v4101_v16 = vmul.f32 %v5815_v35, %v3389_v51 }
 0x439   : > { %v5589_v27 = vpop.f32.mrf.mxu1 }
 0x43a   : > { %v4117_v58 = vpack.c.bf16 %v4101_v16, %v4101_v16 }
 0x43b   : > { %v3392_v15 = vpop.f32.mrf.mxu1 }
 0x43c   : > { %v4124_v17 = vrot.slane %v4117_v58, %v6179_v53 }
 0x43d   : > { %v5590_v8 = vpop.f32.mrf.mxu1 }
 0x43f   : > { %v3435_v37 = vpop.f32.mrf.mxu0 }
 0x440   : > { %v4102_v63 = vmul.f32 %v5817_v38, %v3435_v37 }
 0x441   : > { %v5595_v2 = vpop.f32.mrf.mxu0 }
 0x442   : > { %v4151_v36 = vpack.c.bf16 %v4102_v63, %v4102_v63 }
 0x443   : > { %v3438_v7 = vpop.f32.mrf.mxu0 }
 0x444   : > { %v4158_v40 = vrot.slane %v4151_v36, %v6179_v53 }
 0x445   : > { %v5596_v29 = vpop.f32.mrf.mxu0 }
 0x446   : > { %v5827_v29 = vpop.eup %5826 }
 0x447   : > { %v3481_v6 = vpop.f32.mrf.mxu1  ;;  %v3527_v52 = vpop.f32.mrf.mxu0 }
 0x448   : > { %v4103_v13 = vmul.f32 %v5821_v12, %v3481_v6  ;;  %v4104_v43 = vmul.f32 %v5819_v59, %v3527_v52  ;;  %v5829_v55 = vpop.eup %5828 }
 0x449   : > { %v5601_v33 = vpop.f32.mrf.mxu1  ;;  %v5607_v62 = vpop.f32.mrf.mxu0 }
 0x44a   : > { %v4125_v0 = vpack.c.bf16 %v4103_v13, %v4103_v13  ;;  %v4159_v23 = vpack.c.bf16 %v4104_v43, %v4104_v43 }
 0x44b   : > { %v3484_v30 = vpop.f32.mrf.mxu1  ;;  %v3530_v41 = vpop.f32.mrf.mxu0 }
 0x44c   : > { %v4132_v21 = vrot.slane %v4125_v0, %v6179_v53  ;;  %v4166_v56 = vrot.slane %v4159_v23, %v6179_v53 }
 0x44d   : > { %v5602_v18 = vpop.f32.mrf.mxu1  ;;  %v5608_v19 = vpop.f32.mrf.mxu0 }
 0x44e   : > { %v4133_v10 = vcombine.low %v4124_v17, %v4132_v21  ;;  %v4134_v61 = vcombine.high %v4124_v17, %v4132_v21  ;;  %v4167_v25 = vcombine.low %v4158_v40, %v4166_v56  ;;  %v4168_v45 = vcombine.high %v4158_v40, %v4166_v56 }
 0x44f   : > { %v3573_v4 = vpop.f32.mrf.mxu1  ;;  %v3619_v11 = vpop.f32.mrf.mxu0 }
 0x450   : > { %v4141_v24 = vrot.slane %v4133_v10, %v6188_v3  ;;  %v4148_v42 = vrot.slane %v4134_v61, %v6188_v3  ;;  %v4175_v60 = vrot.slane %v4167_v25, %v6188_v3  ;;  %v4182_v31 = vrot.slane %v4168_v45, %v6188_v3 }
 0x451   : > { %v4105_v14 = vmul.f32 %v5825_v28, %v3573_v4  ;;  %v4106_v50 = vmul.f32 %v5823_v34, %v3619_v11  ;;  %v5613_v32 = vpop.f32.mrf.mxu1  ;;  %v5619_v44 = vpop.f32.mrf.mxu0 }
 0x452   : > { %v4149_v22 = vcombine.high %v4141_v24, %v5916_v47  ;;  %v4150_v26 = vcombine.high %v4148_v42, %v5916_v47  ;;  %v4393_v48 = vshrl.u32 %v4141_v24, 16  ;;  %v4409_v57 = vshrl.u32 %v4148_v42, 16 }
 0x453   : > { %v4183_v39 = vcombine.high %v4175_v60, %v5916_v47  ;;  %v4184_v9 = vcombine.high %v4182_v31, %v5916_v47  ;;  %v4391_v5 = vpack.i.b16 %v4175_v60, %v4141_v24  ;;  %v4394_v20 = vshrl.u32 %v4175_v60, 16  ;;  %v3576_v54 = vpop.f32.mrf.mxu1  ;;  %v3622_v51 = vpop.f32.mrf.mxu0 }
 0x454   : > { %v4401_v27 = vshrl.u32 %v4149_v22, 16  ;;  %v4417_v15 = vshrl.u32 %v4150_v26, 16  ;;  %v4407_v8 = vpack.i.b16 %v4182_v31, %v4148_v42  ;;  %v4410_v1 = vshrl.u32 %v4182_v31, 16 }
 0x455   : > { %v4395_v37 = vpack.i.b16 %v4394_v20, %v4393_v48  ;;  %v4399_v46 = vpack.i.b16 %v4183_v39, %v4149_v22  ;;  %v4402_v2 = vshrl.u32 %v4183_v39, 16  ;;  %v4415_v35 = vpack.i.b16 %v4184_v9, %v4150_v26  ;;  %v5614_v38 = vpop.f32.mrf.mxu1  ;;  %v5620_v7 = vpop.f32.mrf.mxu0 }
 0x456   : > { %v4411_v16 = vpack.i.b16 %v4410_v1, %v4409_v57  ;;  %v4418_v63 = vshrl.u32 %v4184_v9, 16  ;;  %v4517_v49 = vcombine.low %v4391_v5, %v4407_v8  ;;  %v4185_v13 = vpack.c.bf16 %v4105_v14, %v4105_v14 }
 0x457   : > { %v4403_v59 = vpack.i.b16 %v4402_v2, %v4401_v27  ;;  %v4525_v12 = vcombine.low %v4399_v46, %v4415_v35  ;;  %v3665_v6 = vpop.f32.mrf.mxu1  ;;  %v3711_v52 = vpop.f32.mrf.mxu0  ;;  %v4219_v33 = vpack.c.bf16 %v4106_v50, %v4106_v50 }
 0x458   : > { %v4419_v58 = vpack.i.b16 %v4418_v63, %v4417_v15  ;;  %v4542_v36 = vcombine.low %v4395_v37, %v4411_v16  ;;  %v4107_v43 = vmul.f32 %v5827_v29, %v3665_v6  ;;  %v4108_v62 = vmul.f32 %v5829_v55, %v3711_v52 }
 0x459   : > { %v5625_v0 = vpop.f32.mrf.mxu1  ;;  %v5631_v23 = vpop.f32.mrf.mxu0  ;;  %v4532_v30 = vrot.slane %v4525_v12, %v6179_v53  ;;  %v4524_v18 = vrot.slane %v4517_v49, %v6179_v53  ;;  %v4192_v19 = vrot.slane %v4185_v13, %v6179_v53  ;;  %v4226_v45 = vrot.slane %v4219_v33, %v6179_v53 }
 0x45a   : > { %v4193_v41 = vpack.c.bf16 %v4107_v43, %v4107_v43  ;;  %v4550_v17 = vcombine.low %v4403_v59, %v4419_v58  ;;  %v4227_v40 = vpack.c.bf16 %v4108_v62, %v4108_v62  ;;  %v4549_v61 = vrot.slane %v4542_v36, %v6179_v53 }
 0x45b   : > { %v3668_v21 = vpop.f32.mrf.mxu1  ;;  %v3714_v56 = vpop.f32.mrf.mxu0  ;;  %v4533_v28 = vcombine.low %v4524_v18, %v4532_v30  ;;  %v4822_v30 = vld [vmem:[#allocation2] sm:$0x1] }
 0x45c   : > { %v4200_v10 = vrot.slane %v4193_v41, %v6179_v53  ;;  %v4557_v25 = vrot.slane %v4550_v17, %v6179_v53  ;;  %v4234_v34 = vrot.slane %v4227_v40, %v6179_v53  ;;  %v4836_v40 = vld [vmem:[#allocation2 + $0x4] sm:$0x1] }
 0x45d   : > { %v5626_v4 = vpop.f32.mrf.mxu1  ;;  %v5632_v11 = vpop.f32.mrf.mxu0  ;;  %v6951_v26 = vrot.slane %v4533_v28, %v6188_v3 }
 0x45e   : > { %v4201_v24 = vcombine.low %v4192_v19, %v4200_v10  ;;  %v4202_v42 = vcombine.high %v4192_v19, %v4200_v10  ;;  %v4558_v60 = vcombine.low %v4549_v61, %v4557_v25  ;;  %v4235_v31 = vcombine.low %v4226_v45, %v4234_v34  ;;  %v4825_v4 = vld [vmem:[#allocation2 + $0x8] sm:$0x1]  ;;  %v4839_v11 = vld [vmem:[#allocation2 + $0xc] sm:$0x1] }
 0x45f   : > { %v4236_v14 = vcombine.high %v4226_v45, %v4234_v34  ;;  %v4720_v49 = vshrl.u32 %v6951_v26, 16  ;;  %v4541_v55 = vcombine.high %v6951_v26, %v5916_v47  ;;  %v4823_v45 = vsel %vm6974_vm8, 0, %v4822_v30 }
 0x460   : > { %v4209_v50 = vrot.slane %v4201_v24, %v6188_v3  ;;  %v4216_v32 = vrot.slane %v4202_v42, %v6188_v3  ;;  %v4243_v44 = vrot.slane %v4235_v31, %v6188_v3  ;;  %v6954_v48 = vrot.slane %v4558_v60, %v6188_v3  ;;  %4824 = vst [vmem:[#allocation2] sm:$0x1] %v4823_v45 }
 0x461   : > { %v4250_v22 = vrot.slane %v4236_v14, %v6188_v3  ;;  %v4726_v21 = vshrl.u32 %v4541_v55, 16  ;;  %v4837_v42 = vsel %vm6984_vm10, 0, %v4836_v40  ;;  %v4826_v14 = vsel %vm6974_vm8, 0, %v4825_v4 }
 0x462   : > { %v4217_v57 = vcombine.high %v4209_v50, %v5916_v47  ;;  %v4218_v39 = vcombine.high %v4216_v32, %v5916_v47  ;;  %v4425_v9 = vshrl.u32 %v4209_v50, 16  ;;  %v4441_v5 = vshrl.u32 %v4216_v32, 16  ;;  %4838 = vst [vmem:[#allocation2 + $0x4] sm:$0x1] %v4837_v42  ;;  %4827 = vst [vmem:[#allocation2 + $0x8] sm:$0x1] %v4826_v14 }
 0x463   : > { %v4251_v20 = vcombine.high %v4243_v44, %v5916_v47  ;;  %v4252_v54 = vcombine.high %v4250_v22, %v5916_v47  ;;  %v4423_v51 = vpack.i.b16 %v4243_v44, %v4209_v50  ;;  %v4426_v27 = vshrl.u32 %v4243_v44, 16 }
 0x464   : > { %v4433_v15 = vshrl.u32 %v4217_v57, 16  ;;  %v4449_v8 = vshrl.u32 %v4218_v39, 16  ;;  %v4439_v1 = vpack.i.b16 %v4250_v22, %v4216_v32  ;;  %v4442_v37 = vshrl.u32 %v4250_v22, 16 }
 0x465   : > { %v4427_v46 = vpack.i.b16 %v4426_v27, %v4425_v9  ;;  %v4431_v2 = vpack.i.b16 %v4251_v20, %v4217_v57  ;;  %v4434_v35 = vshrl.u32 %v4251_v20, 16  ;;  %v4447_v38 = vpack.i.b16 %v4252_v54, %v4218_v39 }
 0x466   : > { %v4443_v7 = vpack.i.b16 %v4442_v37, %v4441_v5  ;;  %v4450_v16 = vshrl.u32 %v4252_v54, 16  ;;  %v4567_v63 = vcombine.low %v4423_v51, %v4439_v1  ;;  %v4721_v12 = vshrl.u32 %v6954_v48, 16  ;;  %v3310_v37 = vpop.xlane.xlu1 %3309 }
 0x467   : > { %v4435_v29 = vpack.i.b16 %v4434_v35, %v4433_v15  ;;  %v4575_v59 = vcombine.low %v4431_v2, %v4447_v38  ;;  %v4566_v58 = vcombine.high %v6954_v48, %v5916_v47  ;;  %v4719_v33 = vpack.i.b16 %v6954_v48, %v6951_v26  ;;  %v4902_v26 = vld [vmem:[#allocation2] sm:$0xf] }
 0x468   : > { %v4451_v6 = vpack.i.b16 %v4450_v16, %v4449_v8  ;;  %v4592_v52 = vcombine.low %v4427_v46, %v4443_v7  ;;  %v4722_v36 = vpack.i.b16 %v4721_v12, %v4720_v49  ;;  %v4574_v13 = vrot.slane %v4567_v63, %v6179_v53  ;;  %v3313_v46 = vpop.xlane.xlu0 %3312 }
 0x469   : > { %v4582_v43 = vrot.slane %v4575_v59, %v6179_v53  ;;  %v4725_v62 = vpack.i.b16 %v4566_v58, %v4541_v55  ;;  %v4727_v0 = vshrl.u32 %v4566_v58, 16  ;;  %v4840_v50 = vsel %vm6984_vm10, 0, %v4839_v11  ;;  %v4905_v48 = vld [vmem:[#allocation2 + $0x4] sm:$0x1] }
 0x46a   : > { %v4600_v23 = vcombine.low %v4435_v29, %v4451_v6  ;;  %4765 = vrot.lane.b32.xlu1 %v4722_v36, %s5918_s29  ;;  %v3757_v41 = vpop.f32.mrf.mxu1  ;;  %v4599_v56 = vrot.slane %v4592_v52, %v6179_v53  ;;  %4841 = vst [vmem:[#allocation2 + $0xc] sm:$0x1] %v4840_v50  ;;  %5830 = vrcp.f32 %v3310_v37  ;;  %v3316_v2 = vpop.xlane.xlu1 %3315 }
 0x46b   : > { %v4583_v17 = vcombine.low %v4574_v13, %v4582_v43  ;;  %4773 = vrot.lane.b32.xlu0 %v4725_v62, %s5919_s16  ;;  %v4728_v28 = vpack.i.b16 %v4727_v0, %v4726_v21  ;;  %5832 = vrcp.f32 %v3313_v46 }
 0x46c   : > { %v4607_v18 = vrot.slane %v4600_v23, %v6179_v53  ;;  %v5637_v10 = vpop.f32.mrf.mxu1  ;;  %v3803_v61 = vpop.f32.mrf.mxu0  ;;  %5834 = vrcp.f32 %v3316_v2 }
 0x46d   : > { %v6979_v25 = vrot.slane %v4583_v17, %v6188_v3  ;;  %v3319_v35 = vpop.xlane.xlu0 %3318 }
 0x46e   : > { %v4608_v24 = vcombine.low %v4599_v56, %v4607_v18  ;;  %v3760_v60 = vpop.f32.mrf.mxu1  ;;  %v5643_v31 = vpop.f32.mrf.mxu0  ;;  %5836 = vrcp.f32 %v3319_v35 }
 0x46f   : > { %4781 = vrot.lane.b32.xlu0 %v4728_v28, %s5920_s17  ;;  %v4732_v57 = vshrl.u32 %v6979_v25, 16  ;;  %v4591_v9 = vcombine.high %v6979_v25, %v5916_v47  ;;  %v3322_v38 = vpop.xlane.xlu1 %3321 }
 0x470   : > { %v6996_v32 = vrot.slane %v4608_v24, %v6188_v3  ;;  %v5638_v44 = vpop.f32.mrf.mxu1  ;;  %v3806_v22 = vpop.f32.mrf.mxu0  ;;  %5838 = vrcp.f32 %v3322_v38 }
 0x471   : > { %v4738_v8 = vshrl.u32 %v4591_v9, 16  ;;  %v3325_v16 = vpop.xlane.xlu0 %3324 }
 0x472   : > { %v4733_v39 = vshrl.u32 %v6996_v32, 16  ;;  %v4616_v5 = vcombine.high %v6996_v32, %v5916_v47  ;;  %v4731_v20 = vpack.i.b16 %v6996_v32, %v6979_v25  ;;  %v5644_v54 = vpop.f32.mrf.mxu0  ;;  %5840 = vrcp.f32 %v3325_v16 }
 0x473   : > { %v3328_v6 = vpop.xlane.xlu1 %3327 }
 0x474   : > { %v4734_v51 = vpack.i.b16 %v4733_v39, %v4732_v57  ;;  %v4737_v27 = vpack.i.b16 %v4616_v5, %v4591_v9  ;;  %v4739_v15 = vshrl.u32 %v4616_v5, 16  ;;  %5842 = vrcp.f32 %v3328_v6 }
 0x475   : > { %v3331_v13 = vpop.xlane.xlu0 %3330 }
 0x476   : > { %4767 = vrot.lane.b32.xlu0 %v4734_v51, %s5918_s29  ;;  %4775 = vrot.lane.b32.xlu1 %v4737_v27, %s5919_s16  ;;  %v4740_v1 = vpack.i.b16 %v4739_v15, %v4738_v8  ;;  %5844 = vrcp.f32 %v3331_v13 }
 0x477   : > { %v5831_v7 = vpop.eup %5830 }
 0x478   : > { %v4109_v63 = vmul.f32 %v5831_v7, %v3757_v41  ;;  %v5833_v29 = vpop.eup %5832 }
 0x479   : > { %v5835_v59 = vpop.eup %5834  ;;  %v4110_v49 = vmul.f32 %v5833_v29, %v3803_v61 }
 0x47a   : > { %4783 = vrot.lane.b32.xlu1 %v4740_v1, %s5920_s17  ;;  %v4253_v52 = vpack.c.bf16 %v4109_v63, %v4109_v63 }
 0x47b   : > { %v5837_v36 = vpop.eup %5836  ;;  %v4287_v0 = vpack.c.bf16 %v4110_v49, %v4110_v49 }
 0x47c   : > { %v4260_v17 = vrot.slane %v4253_v52, %v6179_v53 }
 0x47d   : > { %v4294_v45 = vrot.slane %v4287_v0, %v6179_v53  ;;  %v5839_v60 = vpop.eup %5838 }
 0x47f   : > { %v5841_v39 = vpop.eup %5840 }
 0x494   : > { %v3849_v12 = vpop.f32.mrf.mxu1 }
 0x495   : > { %v4111_v55 = vmul.f32 %v5835_v59, %v3849_v12 }
 0x496   : > { %v5649_v58 = vpop.f32.mrf.mxu1 }
 0x497   : > { %v4261_v43 = vpack.c.bf16 %v4111_v55, %v4111_v55  ;;  %v3895_v62 = vpop.f32.mrf.mxu0  ;;  %v5843_v58 = vpop.eup %5842 }
 0x498   : > { %v4112_v23 = vmul.f32 %v5837_v36, %v3895_v62  ;;  %v3852_v30 = vpop.f32.mrf.mxu1 }
 0x499   : > { %v4268_v41 = vrot.slane %v4261_v43, %v6179_v53  ;;  %v5655_v40 = vpop.f32.mrf.mxu0 }
 0x49a   : > { %v4295_v21 = vpack.c.bf16 %v4112_v23, %v4112_v23  ;;  %v5650_v56 = vpop.f32.mrf.mxu1 }
 0x49b   : > { %v4269_v18 = vcombine.low %v4260_v17, %v4268_v41  ;;  %v4270_v10 = vcombine.high %v4260_v17, %v4268_v41  ;;  %v3898_v61 = vpop.f32.mrf.mxu0 }
 0x49c   : > { %v4302_v4 = vrot.slane %v4295_v21, %v6179_v53  ;;  %v3941_v11 = vpop.f32.mrf.mxu1  ;;  %v5845_v21 = vpop.eup %5844 }
 0x49d   : > { %v4277_v28 = vrot.slane %v4269_v18, %v6188_v3  ;;  %v4284_v24 = vrot.slane %v4270_v10, %v6188_v3  ;;  %v5656_v42 = vpop.f32.mrf.mxu0  ;;  %v4113_v22 = vmul.f32 %v5839_v60, %v3941_v11 }
 0x49e   : > { %v4303_v31 = vcombine.low %v4294_v45, %v4302_v4  ;;  %v4304_v14 = vcombine.high %v4294_v45, %v4302_v4  ;;  %v5661_v50 = vpop.f32.mrf.mxu1 }
 0x49f   : > { %v4285_v44 = vcombine.high %v4277_v28, %v5916_v47  ;;  %v3987_v57 = vpop.f32.mrf.mxu0  ;;  %v4286_v51 = vcombine.high %v4284_v24, %v5916_v47  ;;  %v4457_v27 = vshrl.u32 %v4277_v28, 16  ;;  %v4473_v15 = vshrl.u32 %v4284_v24, 16 }
 0x4a0   : > { %v4311_v9 = vrot.slane %v4303_v31, %v6188_v3  ;;  %v4318_v5 = vrot.slane %v4304_v14, %v6188_v3  ;;  %v3944_v54 = vpop.f32.mrf.mxu1  ;;  %v4114_v8 = vmul.f32 %v5841_v39, %v3987_v57  ;;  %v4321_v29 = vpack.c.bf16 %v4113_v22, %v4113_v22  ;;  %v4828_v57 = vld [vmem:[#allocation2 + $0x10] sm:$0x1]  ;;  %v4842_v39 = vld [vmem:[#allocation2 + $0x14] sm:$0x1] }
 0x4a1   : > { %v5667_v1 = vpop.f32.mrf.mxu0  ;;  %v4465_v7 = vshrl.u32 %v4285_v44, 16  ;;  %v4481_v36 = vshrl.u32 %v4286_v51, 16 }
 0x4a2   : > { %v4319_v37 = vcombine.high %v4311_v9, %v5916_v47  ;;  %v4320_v46 = vcombine.high %v4318_v5, %v5916_v47  ;;  %v4455_v2 = vpack.i.b16 %v4311_v9, %v4277_v28  ;;  %v4458_v35 = vshrl.u32 %v4311_v9, 16  ;;  %v5662_v38 = vpop.f32.mrf.mxu1 }
 0x4a3   : > { %v4471_v16 = vpack.i.b16 %v4318_v5, %v4284_v24  ;;  %v4474_v63 = vshrl.u32 %v4318_v5, 16  ;;  %v3990_v59 = vpop.f32.mrf.mxu0  ;;  %v4355_v17 = vpack.c.bf16 %v4114_v8, %v4114_v8  ;;  %v4328_v24 = vrot.slane %v4321_v29, %v6179_v53 }
 0x4a4   : > { %v4459_v49 = vpack.i.b16 %v4458_v35, %v4457_v27  ;;  %v4463_v12 = vpack.i.b16 %v4319_v37, %v4285_v44  ;;  %v4466_v6 = vshrl.u32 %v4319_v37, 16  ;;  %v4479_v52 = vpack.i.b16 %v4320_v46, %v4286_v51  ;;  %v4033_v55 = vpop.f32.mrf.mxu1 }
 0x4a5   : > { %v4475_v13 = vpack.i.b16 %v4474_v63, %v4473_v15  ;;  %v4482_v43 = vshrl.u32 %v4320_v46, 16  ;;  %v4617_v62 = vcombine.low %v4455_v2, %v4471_v16  ;;  %v5668_v0 = vpop.f32.mrf.mxu0  ;;  %v4115_v41 = vmul.f32 %v5843_v58, %v4033_v55 }
 0x4a6   : > { %v4467_v23 = vpack.i.b16 %v4466_v6, %v4465_v7  ;;  %v4625_v30 = vcombine.low %v4463_v12, %v4479_v52  ;;  %v5673_v40 = vpop.f32.mrf.mxu1  ;;  %v4362_v31 = vrot.slane %v4355_v17, %v6179_v53  ;;  %v4829_v51 = vsel %vm6974_vm8, 0, %v4828_v57 }
 0x4a7   : > { %v4483_v56 = vpack.i.b16 %v4482_v43, %v4481_v36  ;;  %v4642_v18 = vcombine.low %v4459_v49, %v4475_v13  ;;  %v4079_v10 = vpop.f32.mrf.mxu0  ;;  %v4329_v61 = vpack.c.bf16 %v4115_v41, %v4115_v41  ;;  %v4624_v11 = vrot.slane %v4617_v62, %v6179_v53  ;;  %4830 = vst [vmem:[#allocation2 + $0x10] sm:$0x1] %v4829_v51 }
 0x4a8   : > { %v4116_v45 = vmul.f32 %v5845_v21, %v4079_v10  ;;  %v4036_v4 = vpop.f32.mrf.mxu1  ;;  %v4632_v28 = vrot.slane %v4625_v30, %v6179_v53  ;;  %v4843_v27 = vsel %vm6984_vm10, 0, %v4842_v39 }
 0x4a9   : > { %v5679_v42 = vpop.f32.mrf.mxu0  ;;  %v4650_v60 = vcombine.low %v4467_v23, %v4483_v56  ;;  %v4336_v14 = vrot.slane %v4329_v61, %v6179_v53  ;;  %v4649_v5 = vrot.slane %v4642_v18, %v6179_v53  ;;  %4844 = vst [vmem:[#allocation2 + $0x14] sm:$0x1] %v4843_v27  ;;  %v4831_v27 = vld [vmem:[#allocation2 + $0x18] sm:$0x1] }
 0x4aa   : > { %v4363_v50 = vpack.c.bf16 %v4116_v45, %v4116_v45  ;;  %v5674_v44 = vpop.f32.mrf.mxu1  ;;  %v4633_v22 = vcombine.low %v4624_v11, %v4632_v28 }
 0x4ab   : > { %v4082_v9 = vpop.f32.mrf.mxu0  ;;  %v4657_v54 = vrot.slane %v4650_v60, %v6179_v53  ;;  %v4337_v15 = vcombine.low %v4328_v24, %v4336_v14  ;;  %v4338_v8 = vcombine.high %v4328_v24, %v4336_v14 }
 0x4ac   : > { %v4370_v1 = vrot.slane %v4363_v50, %v6179_v53  ;;  %v7034_v37 = vrot.slane %v4633_v22, %v6188_v3 }
 0x4ad   : > { %v5680_v46 = vpop.f32.mrf.mxu0  ;;  %v4658_v2 = vcombine.low %v4649_v5, %v4657_v54  ;;  %v4345_v35 = vrot.slane %v4337_v15, %v6188_v3  ;;  %v4352_v38 = vrot.slane %v4338_v8, %v6188_v3  ;;  %v4845_v15 = vld [vmem:[#allocation2 + $0x1c] sm:$0x1] }
 0x4ae   : > { %v4371_v7 = vcombine.low %v4362_v31, %v4370_v1  ;;  %v4372_v16 = vcombine.high %v4362_v31, %v4370_v1  ;;  %v4744_v29 = vshrl.u32 %v7034_v37, 16  ;;  %v4641_v59 = vcombine.high %v7034_v37, %v5916_v47 }
 0x4af   : > { %v7039_v63 = vrot.slane %v4658_v2, %v6188_v3  ;;  %v4353_v49 = vcombine.high %v4345_v35, %v5916_v47  ;;  %v4354_v12 = vcombine.high %v4352_v38, %v5916_v47  ;;  %v4489_v6 = vshrl.u32 %v4345_v35, 16 }
 0x4b0   : > { %v4505_v52 = vshrl.u32 %v4352_v38, 16  ;;  %v4379_v55 = vrot.slane %v4371_v7, %v6188_v3  ;;  %v4386_v58 = vrot.slane %v4372_v16, %v6188_v3  ;;  %v4750_v0 = vshrl.u32 %v4641_v59, 16 }
 0x4b1   : > { %v4745_v36 = vshrl.u32 %v7039_v63, 16  ;;  %v4666_v13 = vcombine.high %v7039_v63, %v5916_v47  ;;  %v4497_v43 = vshrl.u32 %v4353_v49, 16  ;;  %v4513_v62 = vshrl.u32 %v4354_v12, 16 }
 0x4b2   : > { %v4743_v23 = vpack.i.b16 %v7039_v63, %v7034_v37  ;;  %v4387_v30 = vcombine.high %v4379_v55, %v5916_v47  ;;  %v4388_v17 = vcombine.high %v4386_v58, %v5916_v47  ;;  %v4487_v41 = vpack.i.b16 %v4379_v55, %v4345_v35 }
 0x4b3   : > { %v4490_v40 = vshrl.u32 %v4379_v55, 16  ;;  %v4503_v21 = vpack.i.b16 %v4386_v58, %v4352_v38  ;;  %v4506_v56 = vshrl.u32 %v4386_v58, 16  ;;  %v4746_v18 = vpack.i.b16 %v4745_v36, %v4744_v29 }
 0x4b4   : > { %v4749_v10 = vpack.i.b16 %v4666_v13, %v4641_v59  ;;  %v4495_v45 = vpack.i.b16 %v4387_v30, %v4353_v49  ;;  %v4498_v4 = vshrl.u32 %v4387_v30, 16  ;;  %v4511_v11 = vpack.i.b16 %v4388_v17, %v4354_v12 }
 0x4b5   : > { %v4491_v61 = vpack.i.b16 %v4490_v40, %v4489_v6  ;;  %v4507_v28 = vpack.i.b16 %v4506_v56, %v4505_v52  ;;  %v4514_v24 = vshrl.u32 %v4388_v17, 16  ;;  %v4667_v42 = vcombine.low %v4487_v41, %v4503_v21  ;;  %4769 = vrot.lane.b32.xlu1 %v4746_v18, %s5918_s29 }
 0x4b6   : > { %4777 = vrot.lane.b32.xlu0 %v4749_v10, %s5919_s16  ;;  %v4751_v60 = vshrl.u32 %v4666_v13, 16  ;;  %v4499_v31 = vpack.i.b16 %v4498_v4, %v4497_v43  ;;  %v4675_v14 = vcombine.low %v4495_v45, %v4511_v11  ;;  %v4832_v46 = vsel %vm6974_vm8, 0, %v4831_v27 }
 0x4b7   : > { %v4515_v50 = vpack.i.b16 %v4514_v24, %v4513_v62  ;;  %v4692_v44 = vcombine.low %v4491_v61, %v4507_v28  ;;  %v4674_v57 = vrot.slane %v4667_v42, %v6179_v53  ;;  %v4846_v2 = vsel %vm6984_vm10, 0, %v4845_v15  ;;  %4833 = vst [vmem:[#allocation2 + $0x18] sm:$0x1] %v4832_v46  ;;  %v4911_v28 = vld [vmem:[#allocation2 + $0xc] sm:$0x1] }
 0x4b8   : > { %v4752_v22 = vpack.i.b16 %v4751_v60, %v4750_v0  ;;  %v4682_v39 = vrot.slane %v4675_v14, %v6179_v53  ;;  %4847 = vst [vmem:[#allocation2 + $0x1c] sm:$0x1] %v4846_v2 }
 0x4b9   : > { %v4700_v9 = vcombine.low %v4499_v31, %v4515_v50  ;;  %v4699_v54 = vrot.slane %v4692_v44, %v6179_v53 }
 0x4ba   : > { %4785 = vrot.lane.b32.xlu0 %v4752_v22, %s5920_s17  ;;  %v4683_v5 = vcombine.low %v4674_v57, %v4682_v39 }
 0x4bb   : > { %v4707_v51 = vrot.slane %v4700_v9, %v6179_v53 }
 0x4bc   : > { %v7063_v8 = vrot.slane %v4683_v5, %v6188_v3 }
 0x4bd   : > { %v4708_v1 = vcombine.low %v4699_v54, %v4707_v51 }
 0x4be   : > { %v4756_v38 = vshrl.u32 %v7063_v8, 16  ;;  %v4691_v34 = vcombine.high %v7063_v8, %v5916_v47 }
 0x4bf   : > { %v7070_v35 = vrot.slane %v4708_v1, %v6188_v3 }
 0x4c0   : > { %v4762_v3 = vshrl.u32 %v4691_v34, 16 }
 0x4c1   : > { %v4757_v53 = vshrl.u32 %v7070_v35, 16  ;;  %v4755_v7 = vpack.i.b16 %v7070_v35, %v7063_v8  ;;  %v4716_v29 = vcombine.high %v7070_v35, %v5916_v47  ;;  %v5779_v8 = vld [vmem:[%s7240_s7 + $0x10] sm:$0xff]  }
 0x4c3   : > { %v4758_v16 = vpack.i.b16 %v4757_v53, %v4756_v38  ;;  %v4761_v59 = vpack.i.b16 %v4716_v29, %v4691_v34  ;;  %v4763_v49 = vshrl.u32 %v4716_v29, 16 }
 0x4c5   : > { %4771 = vrot.lane.b32.xlu1 %v4758_v16, %s5918_s29  ;;  %v4764_v12 = vpack.i.b16 %v4763_v49, %v4762_v3 }
 0x4c9   : > { %4779 = vrot.lane.b32.xlu1 %v4761_v59, %s5919_s16  ;;  %s5344_s16 = sshll.u32 %s5994_s13, 9 }
 0x4ca   : > { %s7189_s23 = scalar_lea.hbm %s7242_s9, %s5344_s16 }
 0x4cd   : > { %4787 = vrot.lane.b32.xlu1 %v4764_v12, %s5920_s17 }
 0x4dc   : > { %v4766_v6 = vpop.permute.xlu1 %4765 }
 0x4dd   : > { %v4774_v52 = vpop.permute.xlu0 %4773  ;;  %v4791_v55 = vsel %vm2451_vm4, %v4719_v33, %v4766_v6 }
 0x4de   : > { %v4803_v58 = vsel %vm4801_vm11, %v4791_v55, %v4774_v52  ;;  %v4914_v55 = vld [vmem:[#allocation2 + $0x10] sm:$0xf] }
 0x4e1   : > { %v4782_v47 = vpop.permute.xlu0 %4781 }
 0x4e2   : > { %v4812_v36 = vsel %vm4810_vm12, %v4803_v58, %v4782_v47  ;;  %v4917_v58 = vld [vmem:[#allocation2 + $0x14] sm:$0x1] }
 0x4e3   : > { %v5319_v13 = vcombine.low %v4812_v36, %v4812_v36 }
 0x4e5   : > { %v4861_v43 = vshrl.u32 %v5319_v13, 16  ;;  %v4864_v0 = vshll.u32 %v5319_v13, 16 }
 0x4e7   : > { %v4863_v62 = vrot.slane %v4861_v43, 7 }
 0x4e8   : > { %v4768_v30 = vpop.permute.xlu0 %4767  ;;  %v4776_v17 = vpop.permute.xlu1 %4775 }
 0x4e9   : > { %v4794_v33 = vsel %vm2451_vm4, %v4731_v20, %v4768_v30  ;;  %v4866_v40 = vor.u32 %v4864_v0, %v4863_v62  ;;  %v4867_v21 = vrot.slane %v4863_v62, 4  ;;  %v4908_v20 = vld [vmem:[#allocation2 + $0x8] sm:$0xf]  ;;  %v5777_v30 = vld [vmem:[%s7240_s7 + $0x20] sm:$0xff]  }
 0x4ea   : > { %v4805_v10 = vsel %vm4801_vm11, %v4794_v33, %v4776_v17 }
 0x4eb   : > { %v4903_v56 = vsel %vm7090_vm14, %v4866_v40, %v4902_v26  ;;  %v4906_v18 = vsel %vm6974_vm8, %v4867_v21, %v4905_v48  ;;  %v5778_v48 = vld [vmem:[%s7240_s7 + $0x18] sm:$0xff]  }
 0x4ec   : > { %v4784_v61 = vpop.permute.xlu1 %4783  ;;  %4904 = vst [vmem:[#allocation2] sm:$0xf] %v4903_v56  ;;  %4907 = vst [vmem:[#allocation2 + $0x4] sm:$0x1] %v4906_v18 }
 0x4ed   : > { %v4814_v45 = vsel %vm4810_vm12, %v4805_v10, %v4784_v61 }
 0x4ee   : > { %v5320_v4 = vcombine.low %v4814_v45, %v4814_v45 }
 0x4f0   : > { %v4869_v11 = vshrl.u32 %v5320_v4, 16  ;;  %v4872_v32 = vshll.u32 %v5320_v4, 16 }
 0x4f2   : > { %v4871_v25 = vrot.slane %v4869_v11, 7  ;;  %v5780_v11 = vld [vmem:[%s7240_s7 + $0x8] sm:$0xff]  }
 0x4f3   : > { %v7104_v60 = vld [vmem:[#allocation2] sm:$0xf]  ;;  %v4927_v31 = vld [vmem:[#allocation2 + $0x4] sm:$0x1] }
 0x4f4   : > { %v4874_v24 = vor.u32 %v4872_v32, %v4871_v25  ;;  %v4875_v42 = vrot.slane %v4871_v25, 4  ;;  %v5323_v14 = vcombine.low %v7104_v60, %v4927_v31  ;;  %v4920_v25 = vld [vmem:[#allocation2 + $0x18] sm:$0xf]  ;;  %v4923_v32 = vld [vmem:[#allocation2 + $0x1c] sm:$0x1] }
 0x4f6   : > { %v4909_v50 = vsel %vm7090_vm14, %v4874_v24, %v4908_v20  ;;  %v4912_v44 = vsel %vm6974_vm8, %v4875_v42, %v4911_v28  ;;  %v4990_v22 = vrot.slane %v5323_v14, 1  ;;  %v4957_v57 = vshll.u32 %v5323_v14, 16 }
 0x4f7   : > { %4910 = vst [vmem:[#allocation2 + $0x8] sm:$0xf] %v4909_v50  ;;  %4913 = vst [vmem:[#allocation2 + $0xc] sm:$0x1] %v4912_v44  ;;  %v4955_v39 = vshrl.u32 %v5323_v14, 16  ;;  %v5781_v14 = vld [vmem:[%s7240_s7] sm:$0xff]  }
 0x4f8   : > { %4994 = vrot.lane.b32.xlu0 %v4990_v22, %s5908_s14  ;;  %v4959_v9 = vrot.slane %v4957_v57, 1 }
 0x4fa   : > { %v4960_v5 = vor.u32 %v4959_v9, %v4955_v39 }
 0x4fc   : > { %4982 = vrot.lane.b32.xlu0 %v4960_v5, %s5909_s24 }
 0x4fe   : > { %v7113_v54 = vld [vmem:[#allocation2 + $0x8] sm:$0xf]  ;;  %v4929_v51 = vld [vmem:[#allocation2 + $0xc] sm:$0x1] }
 0x4ff   : > { %v5324_v27 = vcombine.low %v7113_v54, %v4929_v51 }
 0x501   : > { %v4991_v15 = vrot.slane %v5324_v27, 1  ;;  %v4964_v1 = vshll.u32 %v5324_v27, 16  ;;  %v4962_v46 = vshrl.u32 %v5324_v27, 16 }
 0x503   : > { %4996 = vrot.lane.b32.xlu1 %v4991_v15, %s5908_s14  ;;  %v4966_v2 = vrot.slane %v4964_v1, 1 }
 0x505   : > { %v4967_v38 = vor.u32 %v4966_v2, %v4962_v46 }
 0x507   : > { %4984 = vrot.lane.b32.xlu1 %v4967_v38, %s5909_s24 }
 0x527   : > { %v4770_v53 = vpop.permute.xlu1 %4769 }
 0x528   : > { %v4778_v16 = vpop.permute.xlu0 %4777  ;;  %v4797_v29 = vsel %vm2451_vm4, %v4743_v23, %v4770_v53  ;;  %v5776_v23 = vld [vmem:[%s7240_s7 + $0x28] sm:$0xff]  }
 0x529   : > { %v4807_v34 = vsel %vm4801_vm11, %v4797_v29, %v4778_v16  ;;  %5681 = vmatprep.subr.bf16.mxu1 %v5776_v23 }
 0x52a   : > { %5682 = vmatpush3.bf16.msra.mxu1 %v5776_v23 }
 0x52b   : > { %5683 = vmatprep.subr.bf16.mxu1 %v5777_v30 }
 0x52c   : > { %v4786_v59 = vpop.permute.xlu0 %4785 }
 0x52d   : > { %v4816_v49 = vsel %vm4810_vm12, %v4807_v34, %v4786_v59 }
 0x52e   : > { %v5321_v3 = vcombine.low %v4816_v49, %v4816_v49  ;;  %5684 = vmatpush3.bf16.msra.mxu1 %v5777_v30 }
 0x52f   : > { %5685 = vmatprep.subr.bf16.mxu1 %v5778_v48 }
 0x530   : > { %v4877_v12 = vshrl.u32 %v5321_v3, 16  ;;  %v4880_v52 = vshll.u32 %v5321_v3, 16 }
 0x532   : > { %v4879_v6 = vrot.slane %v4877_v12, 7  ;;  %5686 = vmatpush3.bf16.msra.mxu1 %v5778_v48 }
 0x533   : > { %5687 = vmatprep.subr.bf16.mxu1 %v5779_v8 }
 0x534   : > { %v4882_v47 = vor.u32 %v4880_v52, %v4879_v6  ;;  %v4883_v36 = vrot.slane %v4879_v6, 4  ;;  %v5327_v6 = vld [vmem:[%s7241_s8] ss:$0 sm:$0xff] }
 0x536   : > { %v4915_v13 = vsel %vm7090_vm14, %v4882_v47, %v4914_v55  ;;  %v4918_v37 = vsel %vm6974_vm8, %v4883_v36, %v4917_v58  ;;  %5688 = vmatpush3.bf16.msra.mxu1 %v5779_v8 }
 0x537   : > { %4916 = vst [vmem:[#allocation2 + $0x10] sm:$0xf] %v4915_v13  ;;  %4919 = vst [vmem:[#allocation2 + $0x14] sm:$0x1] %v4918_v37  ;;  %v4772_v63 = vpop.permute.xlu1 %4771  ;;  %5689 = vmatprep.subr.bf16.mxu1 %v5780_v11 }
 0x538   : > { %v4800_v17 = vsel %vm2451_vm4, %v4755_v7, %v4772_v63 }
 0x53a   : > { %5690 = vmatpush3.bf16.msra.mxu1 %v5780_v11 }
 0x53b   : > { %v4780_v43 = vpop.permute.xlu1 %4779  ;;  %5691 = vmatprep.subr.bf16.mxu1 %v5781_v14 }
 0x53c   : > { %v4809_v33 = vsel %vm4801_vm11, %v4800_v17, %v4780_v43 }
 0x53e   : > { %v7131_v62 = vld [vmem:[#allocation2 + $0x10] sm:$0xf]  ;;  %v4931_v0 = vld [vmem:[#allocation2 + $0x14] sm:$0x1]  ;;  %5692 = vmatpush3.bf16.msra.mxu1 %v5781_v14 }
 0x53f   : > { %v5325_v26 = vcombine.low %v7131_v62, %v4931_v0  ;;  %v4788_v40 = vpop.permute.xlu1 %4787 }
 0x540   : > { %v4818_v21 = vsel %vm4810_vm12, %v4809_v33, %v4788_v40 }
 0x541   : > { %v4971_v56 = vshll.u32 %v5325_v26, 16  ;;  %v5322_v18 = vcombine.low %v4818_v21, %v4818_v21  ;;  %v4969_v35 = vshrl.u32 %v5325_v26, 16  ;;  %v4992_v24 = vrot.slane %v5325_v26, 1 }
 0x543   : > { %v4973_v7 = vrot.slane %v4971_v56, 1  ;;  %v4885_v10 = vshrl.u32 %v5322_v18, 16  ;;  %v4888_v4 = vshll.u32 %v5322_v18, 16 }
 0x545   : > { %v4974_v61 = vor.u32 %v4973_v7, %v4969_v35  ;;  %v4887_v45 = vrot.slane %v4885_v10, 7 }
 0x547   : > { %4986 = vrot.lane.b32.xlu0 %v4974_v61, %s5909_s24  ;;  %v4890_v20 = vor.u32 %v4888_v4, %v4887_v45  ;;  %v4891_v28 = vrot.slane %v4887_v45, 4 }
 0x549   : > { %v4921_v42 = vsel %vm7090_vm14, %v4890_v20, %v4920_v25  ;;  %v4924_v31 = vsel %vm6974_vm8, %v4891_v28, %v4923_v32 }
 0x54a   : > { %4922 = vst [vmem:[#allocation2 + $0x18] sm:$0xf] %v4921_v42  ;;  %4925 = vst [vmem:[#allocation2 + $0x1c] sm:$0x1] %v4924_v31 }
 0x54b   : > { %4998 = vrot.lane.b32.xlu0 %v4992_v24, %s5908_s14 }
 0x551   : > { %v4932_v50 = vld [vmem:[#allocation2 + $0x18] sm:$0xf]  ;;  %v4933_v44 = vld [vmem:[#allocation2 + $0x1c] sm:$0x1] }
 0x552   : > { %v5326_v22 = vcombine.low %v4932_v50, %v4933_v44 }
 0x554   : > { %v4978_v41 = vshll.u32 %v5326_v22, 16  ;;  %v4976_v57 = vshrl.u32 %v5326_v22, 16  ;;  %v4993_v9 = vrot.slane %v5326_v22, 1 }
 0x556   : > { %v4980_v39 = vrot.slane %v4978_v41, 1 }
 0x558   : > { %v4981_v19 = vor.u32 %v4980_v39, %v4976_v57 }
 0x55a   : > { %4988 = vrot.lane.b32.xlu1 %v4981_v19, %s5909_s24 }
 0x55e   : > { %5000 = vrot.lane.b32.xlu1 %v4993_v9, %s5908_s14  ;;  %s326_s14 = sand.u32 1, %s5898_s10  }
 0x55f   : > { %s5226_s24 = sshll.u32 %s326_s14, 5  ;;  %s7192_s13 = scalar_lea.sflag [#allocation4], %s326_s14 }
 0x560   : > { %s328_s27 = scalar_lea.vmem [#allocation3], %s5226_s24  ;;  %s5921_s24 = smov [#allocation3]  }
 0x561   : > { %s5160_s28 = sshll.u32 %s328_s27, 4  ;;  %s5850_s26 = sshll.u32 %s5921_s24, 4  ;;  %s7183_s28 = int_to_ptr.vmem [resolvable:$true] %s5160_s28  ;;  %s5851_s26 = int_to_ptr.vmem [resolvable:$false] %s5850_s26 }
 0x562   : > { %s5846_s25 = scalar_lea.vmem %s7183_s28, 512  ;;  %s5852_s21 = scalar_lea.vmem %s5851_s26, 1024 }
 0x563   : > { %p5847_p11 = scmp.ne.s32.totalorder %s7183_s28, %s5846_s25  ;;  %p5853_p0 = scmp.lt.s32.totalorder %s7183_s28, %s5851_s26 }
 0x564   : > { %p5854_p1 = scmp.lt.s32.totalorder %s5852_s21, %s5846_s25 }
 0x565   : > { %p5848_p12 = pnand %p5847_p11, %p6011_p5 }
 0x566   : > { %p5855_p2 = por %p5854_p1, %p5853_p0 }
 0x567   : > { %p5849_p13 = pneg %p5848_p12 }
 0x569   : > { %p5856_p3 = pnand %p5855_p2, %p5849_p13 }
 0x56a   : > { %v4995_v5 = vpop.permute.xlu0 %4994 }
 0x56e   : > { %v4983_v51 = vpop.permute.xlu0 %4982 }
 0x56f   : > { %v5004_v15 = vsel %vm414_vm0, %v7104_v60, %v4983_v51 }
 0x570   : > { %v5015_v2 = vsel %vm427_vm1, %v5004_v15, %v4995_v5 }
 0x575   : > { %v4997_v27 = vpop.permute.xlu1 %4996 }
 0x579   : > { %v4985_v1 = vpop.permute.xlu1 %4984 }
 0x57a   : > { %v5007_v46 = vsel %vm414_vm0, %v7113_v54, %v4985_v1 }
 0x57b   : > { %v5017_v38 = vsel %vm427_vm1, %v5007_v46, %v4997_v27 }
 0x57c   : > { %v5328_v53 = vcombine.low %v5015_v2, %v5017_v38 }
 0x57e   : > { %5693 = vmatprep.mubr.msk.bf16.mxu1 %vm501_vm2, %v5328_v53 }
 0x5b9   : > { %v4987_v16 = vpop.permute.xlu0 %4986 }
 0x5ba   : > { %v5010_v59 = vsel %vm414_vm0, %v7131_v62, %v4987_v16 }
 0x5bd   : > { %v4999_v34 = vpop.permute.xlu0 %4998 }
 0x5be   : > { %v5019_v3 = vsel %vm427_vm1, %v5010_v59, %v4999_v34 }
 0x5cc   : > { %v4989_v29 = vpop.permute.xlu1 %4988 }
 0x5cd   : > { %v5013_v60 = vsel %vm414_vm0, %v4932_v50, %v4989_v29 }
 0x5d0   : > { %v5001_v49 = vpop.permute.xlu1 %5000 }
 0x5d1   : > { %v5021_v54 = vsel %vm427_vm1, %v5013_v60, %v5001_v49 }
 0x5d2   : > { %v5329_v12 = vcombine.low %v5019_v3, %v5021_v54 }
 0x5d4   : > { %5694 = vmatmul.mubr.msk.bf16.vlgmr.msra.gmra.mxu1 %vm501_vm2, %v5329_v12 }
 0x694   : > { %v5695_v52 = vpop.f32.mrf.mxu1 }
 0x695   : > { %v5136_v55 = vadd.f32 %v5695_v52, %v5327_v6 }
 0x696   : > { %v5127_v58 = vpop.f32.mrf.mxu1 }
 0x697   : > { %5144 = vst.msk [vmem:[%s328_s27 + $0x10] sm:$0xff] %vm414_vm0, %v5136_v55  ;;  %v5128_v47 = vadd.f32 %v5327_v6, %v5127_v58 }
 0x698   : > { %v5696_v36 = vpop.f32.mrf.mxu1 }
 0x699   : > { %5142 = vst.msk [vmem:[%s328_s27] sm:$0xff] %vm414_vm0, %v5128_v47  ;;  %v5139_v13 = vadd.f32 %v5696_v36, %v5327_v6 }
 0x69a   : > { %v5130_v37 = vpop.f32.mrf.mxu1 }
 0x69b   : > { %5145 = vst.msk [vmem:[%s328_s27 + $0x18] sm:$0xff] %vm414_vm0, %v5139_v13  ;;  %v5131_v63 = vadd.f32 %v5327_v6, %v5130_v37 }
 0x69d   : > { %5143 = vst.msk [vmem:[%s328_s27 + $0x8] sm:$0xff] %vm414_vm0, %v5131_v63 }
 0x69e   : > { %5859 = shalt.err (!%p5856_p3)
}
 0x69f   : > { %s5860_s14 = scalar_lea.hbm %s7189_s23, 512  ;;  %s5864_s17 = scalar_lea.hbm %s7242_s9, 2048 }
 0x6a0   : > { %p5861_p4 = scmp.ne.s32.totalorder %s7189_s23, %s5860_s14  ;;  %p5865_p9 = scmp.lt.s32.totalorder %s7189_s23, %s7242_s9 }
 0x6a1   : > { %p5866_p10 = scmp.lt.s32.totalorder %s5864_s17, %s5860_s14 }
 0x6a2   : > { %p5862_p7 = pnand %p5861_p4, %p6011_p5 }
 0x6a3   : > { %p5867_p11 = por %p5866_p10, %p5865_p9 }
 0x6a4   : > { %p5863_p8 = pneg %p5862_p7 }
 0x6a6   : > { %p5868_p12 = pnand %p5867_p11, %p5863_p8 }
 0x6a8   : > { %5871 = shalt.err (!%p5868_p12)
}
 0x6a9   : > { %s5922_s25 = smov 128  }
 0x6aa   : > { %5697 = dma.vmem_to_hbm [thread:$0]  (%p6011_p5), %s7183_s28, 512, %s7189_s23, %s7192_s13, %s5922_s25, %s5922_s25, %s5918_s29  }
 0x6ab PF: > { %p5703_p13 = scmp.ge.s32.totalorder %s5906_s12, 2  ;;  %s5175_s26 = sand.u32 1, %s5894_s30  }
 0x6ac   : > { %s5176_s21 = scalar_lea.sflag [#allocation4], %s5175_s26 }
 0x6ad   : > { %p5700_p0 = pnand %p5703_p13, %p6015_p6 }
 0x6af   : > { %p5701_p1 = pneg %p5700_p0 }
 0x6b1   : > { %5889 = dma.done.wait (%p5701_p1), %s5176_s21, 512  }
 0x6b2   : > { %5891 = vsyncadd (%p5701_p1), %s5176_s21, 4294966784  ;;  %p19_p2 = scmp.ge.s32.totalorder %s5998_s15, 6   ;;  %s7251_s30 = smov %s5898_s10 }
 0x6b3   : > { %s7252_s10 = smov %s5902_s11  ;;  %s7253_s11 = smov %s6009_s18 }
 0x6b4   : > { %s7254_s12 = smov %s5998_s15  ;;  %21 = sbr.rel (!%p19_p2) target bundleno = 3 (0x3), region = 91 }
 0x6b9   :  { %5181 = vsyncpa [#allocation4], 1 }
 0x6ba   :  { %5183 = vsyncpa [#allocation4 + $0x1], 1 }

</bundles_post_ra>
